<compile_context>
chip_gen: v7x
topology: tpu7x:2x2x1
jax: 0.10.0
libtpu: 0.0.40
codegen_flags: <defaults>
</compile_context>

<pallas_src>
import functools

import jax
import jax.numpy as jnp
import numpy as np
from jax import lax
from jax.experimental import pallas as pl
from jax.experimental.pallas import tpu as pltpu


def _round_up(x, m):
    return ((x + m - 1) // m) * m


# -----------------------------------------------------------------------------
# Kernel 1: chunked LSTM recurrence (the only serial part).
# -----------------------------------------------------------------------------
def _lstm_kernel(xp_ref, whh_ref, h0_ref, c0_ref,
                 hall_ref, cfin_ref,
                 h_scr, c_scr, *, hp, tc):
    """One grid step = (one batch tile) x (chunk of `tc` timesteps)."""
    t_chunk = pl.program_id(1)

    @pl.when(t_chunk == 0)
    def _():
        h_scr[...] = h0_ref[...].astype(jnp.float32)
        c_scr[...] = c0_ref[...].astype(jnp.float32)

    whh = whh_ref[...]                      # (Hp, 4*Hp), grid-invariant

    def step(i, carry):
        h, c = carry
        # The only matmul left on the serial path.
        gates = (xp_ref[i].astype(jnp.float32)
                 + jnp.dot(h.astype(whh.dtype), whh,
                           preferred_element_type=jnp.float32))
        # PyTorch gate order: i, f, g, o -- each a 128-lane-aligned slab.
        i_g = jax.nn.sigmoid(gates[:, 0 * hp:1 * hp])
        f_g = jax.nn.sigmoid(gates[:, 1 * hp:2 * hp])
        g_g = jnp.tanh(gates[:, 2 * hp:3 * hp])
        o_g = jax.nn.sigmoid(gates[:, 3 * hp:4 * hp])
        c_new = f_g * c + i_g * g_g
        h_new = o_g * jnp.tanh(c_new)
        hall_ref[i] = h_new.astype(hall_ref.dtype)
        return (h_new, c_new)

    h, c = lax.fori_loop(0, tc, step, (h_scr[...], c_scr[...]), unroll=True)
    h_scr[...] = h
    c_scr[...] = c

    # Only the last time chunk materializes the final cell state.
    @pl.when(t_chunk == pl.num_programs(1) - 1)
    def _():
        cfin_ref[...] = c.astype(cfin_ref.dtype)


# -----------------------------------------------------------------------------
# Kernel 2: batched MDN head (no recurrence -> processed for all rows at once).
# -----------------------------------------------------------------------------
def _mdn_head_kernel(h_ref, wm_ref, bm_ref,
                     mean_ref, sigma_ref, pi_ref, *, nz, n_mixture, tau):
    wm = wm_ref[...]
    h = h_ref[...].astype(wm.dtype)
    mix = (jnp.dot(h, wm, preferred_element_type=jnp.float32)
           + bm_ref[...])
    mean = mix[:, :nz]
    sigma = jnp.exp(mix[:, nz:2 * nz])
    logits = mix[:, 2 * nz:2 * nz + n_mixture]
    lmax = jnp.max(logits, axis=-1, keepdims=True)
    e = jnp.exp(logits - lmax)
    pi = e / jnp.sum(e, axis=-1, keepdims=True)
    if tau > 0:
        # Matches the PyTorch module: pi /= tau AFTER softmax, sigma *= sqrt(tau).
        pi = pi / tau
        sigma = sigma * (tau ** 0.5)
    mean_ref[...] = mean.astype(mean_ref.dtype)
    sigma_ref[...] = sigma.astype(sigma_ref.dtype)
    pi_ref[...] = pi.astype(pi_ref.dtype)


# -----------------------------------------------------------------------------
# Wrapper
# -----------------------------------------------------------------------------
def _pad_gates_lastdim(w, h, hp):
    """(rows, 4h) -> (rows, 4hp): each gate slab zero-padded to hp lanes."""
    parts = []
    for g in range(4):
        blk = w[:, g * h:(g + 1) * h]
        parts.append(jnp.pad(blk, ((0, 0), (0, hp - h))))
    return jnp.concatenate(parts, axis=-1)


def mdnrnn_forward(inpt, action, params, *, hidden_size, n_mixture, z_dim, tau,
                   hidden_state=None, matmul_dtype=jnp.float32):
    """Pallas MDNRNN forward.

    inpt:   (B, T, z_dim) f32;  action: (B, T, action_dim) f32
    returns (pi, mean, sigma, (h, c)) with PyTorch shapes:
        pi (B,T,n_mixture), mean/sigma (B,T,n_mixture*z_dim), h/c (1,B,hidden).
    """
    B, T, _ = inpt.shape
    H = hidden_size
    NZ = n_mixture * z_dim
    M_out = 2 * NZ + n_mixture

    Hp = _round_up(H, 128)            # lane-aligned gate slabs
    Bp = _round_up(B, 8)              # full f32 sublane tiles
    TB = 8                            # batch tile (parallel axis for v7x TCs)
    # Largest divisor of T among {32,16,8,4,2,1}: amortizes per-grid-step cost.
    TC = max(d for d in (32, 16, 8, 4, 2, 1) if T % d == 0)

    w_ih, w_hh, b_gates, w_mdn, b_mdn = params

    # --- padded, gate-blocked parameters (padding is exact: zeros) -----------
    w_ih_p = _pad_gates_lastdim(w_ih, H, Hp)                          # (Din,4Hp)
    b_p = _pad_gates_lastdim(b_gates, H, Hp)                          # (1, 4Hp)
    w_hh_p = jnp.pad(_pad_gates_lastdim(w_hh, H, Hp), ((0, Hp - H), (0, 0)))
    w_mdn_p = jnp.pad(w_mdn, ((0, Hp - H), (0, 0)))                   # (Hp,Mout)

    # --- hoisted input projection: one big GEMM over the whole sequence -----
    concat = jnp.concatenate([inpt, action], axis=-1)                 # (B,T,Din)
    D_in = concat.shape[-1]
    x_proj = concat.reshape(B * T, D_in) @ w_ih_p + b_p               # (BT,4Hp)
    x_proj = x_proj.reshape(B, T, 4 * Hp).transpose(1, 0, 2)          # (T,B,4Hp)
    x_proj = jnp.pad(x_proj, ((0, 0), (0, Bp - B), (0, 0)))
    x_proj = x_proj.astype(matmul_dtype)

    if hidden_state is None:
        # TODO(synk): PyTorch uses uninitialized `.new(...)` tensors here; we
        # deterministically use zeros.
        h0 = jnp.zeros((Bp, Hp), jnp.float32)
        c0 = jnp.zeros((Bp, Hp), jnp.float32)
    else:
        h0 = jnp.pad(hidden_state[0].reshape(B, H).astype(jnp.float32),
                     ((0, Bp - B), (0, Hp - H)))
        c0 = jnp.pad(hidden_state[1].reshape(B, H).astype(jnp.float32),
                     ((0, Bp - B), (0, Hp - H)))

    w_hh_k = w_hh_p.astype(matmul_dtype)

    lstm_kernel = functools.partial(_lstm_kernel, hp=Hp, tc=TC)
    # NOTE: at production hidden sizes on v7x (64 MiB VMEM), mark the
    # grid-invariant weight spec single-buffered (pipeline_mode=pl.Buffered(1))
    # or raise vmem_limit_bytes; at these sizes it is noise so defaults are kept.
    h_all, c_fin = pl.pallas_call(
        lstm_kernel,
        grid_spec=pltpu.PrefetchScalarGridSpec(
            num_scalar_prefetch=0,
            grid=(Bp // TB, T // TC),
            in_specs=[
                pl.BlockSpec((TC, TB, 4 * Hp), lambda b, t: (t, b, 0)),  # x_proj
                pl.BlockSpec((Hp, 4 * Hp), lambda b, t: (0, 0)),         # W_hh
                pl.BlockSpec((TB, Hp), lambda b, t: (b, 0)),             # h0
                pl.BlockSpec((TB, Hp), lambda b, t: (b, 0)),             # c0
            ],
            out_specs=[
                pl.BlockSpec((TC, TB, Hp), lambda b, t: (t, b, 0)),      # h_t seq
                pl.BlockSpec((TB, Hp), lambda b, t: (b, 0)),             # final c
            ],
            scratch_shapes=[
                pltpu.VMEM((TB, Hp), jnp.float32),                       # h carry
                pltpu.VMEM((TB, Hp), jnp.float32),                       # c carry
            ],
        ),
        out_shape=(
            jax.ShapeDtypeStruct((T, Bp, Hp), jnp.float32),
            jax.ShapeDtypeStruct((Bp, Hp), jnp.float32),
        ),
        compiler_params=pltpu.CompilerParams(
            dimension_semantics=("parallel", "arbitrary")),
    )(x_proj, w_hh_k, h0, c0)

    # --- batched MDN head over all (Bp*T) rows at once ------------------------
    h_bt = h_all.transpose(1, 0, 2).reshape(Bp * T, Hp)               # (R, Hp)
    R = Bp * T
    TR = R if R <= 512 else 512
    R_pad = _round_up(R, TR)
    if R_pad != R:
        h_bt = jnp.pad(h_bt, ((0, R_pad - R), (0, 0)))

    mdn_kernel = functools.partial(_mdn_head_kernel, nz=NZ,
                                   n_mixture=n_mixture, tau=tau)
    mean_f, sigma_f, pi_f = pl.pallas_call(
        mdn_kernel,
        grid_spec=pltpu.PrefetchScalarGridSpec(
            num_scalar_prefetch=0,
            grid=(R_pad // TR,),
            in_specs=[
                pl.BlockSpec((TR, Hp), lambda r: (r, 0)),
                pl.BlockSpec((Hp, M_out), lambda r: (0, 0)),
                pl.BlockSpec((1, M_out), lambda r: (0, 0)),
            ],
            out_specs=[
                pl.BlockSpec((TR, NZ), lambda r: (r, 0)),
                pl.BlockSpec((TR, NZ), lambda r: (r, 0)),
                pl.BlockSpec((TR, n_mixture), lambda r: (r, 0)),
            ],
        ),
        out_shape=(
            jax.ShapeDtypeStruct((R_pad, NZ), jnp.float32),
            jax.ShapeDtypeStruct((R_pad, NZ), jnp.float32),
            jax.ShapeDtypeStruct((R_pad, n_mixture), jnp.float32),
        ),
        compiler_params=pltpu.CompilerParams(
            dimension_semantics=("parallel",)),
    )(h_bt.astype(matmul_dtype), w_mdn_p.astype(matmul_dtype), b_mdn)

    mean = mean_f[:R].reshape(Bp, T, NZ)[:B]
    sigma = sigma_f[:R].reshape(Bp, T, NZ)[:B]
    pi = pi_f[:R].reshape(Bp, T, n_mixture)[:B]

    h_f = h_all[T - 1, :B, :H][None]            # (1, B, H)
    c_f = c_fin[:B, :H][None]                   # (1, B, H)
    return pi, mean, sigma, (h_f, c_f)


# -----------------------------------------------------------------------------
# Pure-JAX reference (matches PyTorch LSTM + Linear semantics).
# -----------------------------------------------------------------------------
def _reference_forward(inpt, action, params, *, hidden_size, n_mixture, z_dim,
                       tau):
    w_ih, w_hh, b_gates, w_mdn, b_mdn = params
    B, T, _ = inpt.shape
    H = hidden_size
    x = jnp.concatenate([inpt, action], axis=-1)
    x_tm = jnp.transpose(x, (1, 0, 2))

    def step(carry, x_t):
        h, c = carry
        g = x_t @ w_ih + h @ w_hh + b_gates[0]
        i = jax.nn.sigmoid(g[:, :H])
        f = jax.nn.sigmoid(g[:, H:2 * H])
        gg = jnp.tanh(g[:, 2 * H:3 * H])
        o = jax.nn.sigmoid(g[:, 3 * H:4 * H])
        c = f * c + i * gg
        h = o * jnp.tanh(c)
        return (h, c), h

    (h_f, c_f), hs = lax.scan(step, (jnp.zeros((B, H)), jnp.zeros((B, H))),
                              x_tm)
    hs = jnp.transpose(hs, (1, 0, 2))                 # (B, T, H)
    mixture = hs.reshape(-1, H) @ w_mdn + b_mdn[0]
    mixture = mixture.reshape(B, T, -1)
    NZ = n_mixture * z_dim
    mean = mixture[..., :NZ]
    sigma = jnp.exp(mixture[..., NZ:2 * NZ])
    pi = jax.nn.softmax(mixture[..., -n_mixture:], axis=-1)
    if tau > 0:
        pi = pi / tau
        sigma = sigma * (tau ** 0.5)
    return pi, mean, sigma, (h_f[None], c_f[None])


if __name__ == "__main__":
    z_dim, action_dim, hidden_size, n_mixture, tau = 8, 4, 32, 5, 1.2
    batch, seq = 2, 8
    D_in = z_dim + action_dim
    NZ = n_mixture * z_dim
    M_out = 2 * NZ + n_mixture

    key = jax.random.PRNGKey(0)
    ks = jax.random.split(key, 8)
    scale = 1.0 / np.sqrt(hidden_size)
    w_ih = jax.random.uniform(ks[0], (D_in, 4 * hidden_size), jnp.float32,
                              -scale, scale)
    w_hh = jax.random.uniform(ks[1], (hidden_size, 4 * hidden_size),
                              jnp.float32, -scale, scale)
    b_gates = jax.random.uniform(ks[2], (1, 4 * hidden_size), jnp.float32,
                                 -scale, scale)          # b_ih + b_hh combined
    w_mdn = jax.random.uniform(ks[3], (hidden_size, M_out), jnp.float32,
                               -scale, scale)
    b_mdn = jax.random.uniform(ks[4], (1, M_out), jnp.float32, -scale, scale)
    params = (w_ih, w_hh, b_gates, w_mdn, b_mdn)

    inpt = jax.random.normal(ks[5], (batch, seq, z_dim), jnp.float32)
    action = jax.random.normal(ks[6], (batch, seq, action_dim), jnp.float32)

    pi, mean, sigma, (h_f, c_f) = mdnrnn_forward(
        inpt, action, params, hidden_size=hidden_size, n_mixture=n_mixture,
        z_dim=z_dim, tau=tau)
    jax.block_until_ready((pi, mean, sigma, h_f, c_f))

    pi_r, mean_r, sigma_r, (h_r, c_r) = _reference_forward(
        inpt, action, params, hidden_size=hidden_size, n_mixture=n_mixture,
        z_dim=z_dim, tau=tau)
    np.testing.assert_allclose(np.asarray(pi), np.asarray(pi_r),
                               rtol=1e-5, atol=1e-5)
    np.testing.assert_allclose(np.asarray(mean), np.asarray(mean_r),
                               rtol=1e-5, atol=1e-5)
    np.testing.assert_allclose(np.asarray(sigma), np.asarray(sigma_r),
                               rtol=1e-5, atol=1e-5)
    np.testing.assert_allclose(np.asarray(h_f), np.asarray(h_r),
                               rtol=1e-5, atol=1e-5)
    np.testing.assert_allclose(np.asarray(c_f), np.asarray(c_r),
                               rtol=1e-5, atol=1e-5)

    print("KERNEL_OK")
</pallas_src>

<mosaic_0001>
module attributes {stable_mosaic.version = 11 : i64} {
  func.func @_lstm_kernel(%arg0: i32, %arg1: i32, %arg2: memref<8x8x512xf32, #tpu.memory_space<vmem>>, %arg3: memref<128x512xf32, #tpu.memory_space<vmem>>, %arg4: memref<8x128xf32, #tpu.memory_space<vmem>>, %arg5: memref<8x128xf32, #tpu.memory_space<vmem>>, %arg6: memref<8x8x128xf32, #tpu.memory_space<vmem>>, %arg7: memref<8x128xf32, #tpu.memory_space<vmem>>, %arg8: memref<8x128xf32, #tpu.memory_space<vmem>>, %arg9: memref<8x128xf32, #tpu.memory_space<vmem>>) attributes {dimension_semantics = [#tpu.dimension_semantics<parallel>, #tpu.dimension_semantics<arbitrary>], iteration_bounds = array<i64: 1, 1>, scalar_prefetch = 0 : i64, scratch_operands = 2 : i64, tpu.core_type = #tpu.core_type<tc>, window_params = [{transform_indices = @transform_0, window_bounds = array<i64: 8, 8, 512>}, {pipeline_mode = #tpu.pipeline_mode<synchronous>, transform_indices = @transform_1, window_bounds = array<i64: 128, 512>}, {transform_indices = @transform_2, window_bounds = array<i64: 8, 128>}, {transform_indices = @transform_3, window_bounds = array<i64: 8, 128>}, {transform_indices = @transform_4, window_bounds = array<i64: 8, 8, 128>}, {transform_indices = @transform_5, window_bounds = array<i64: 8, 128>}]} {
    %c0_i32 = arith.constant 0 : i32
    %0 = arith.cmpi eq, %arg1, %c0_i32 : i32
    %1 = arith.extui %0 : i1 to i32
    %c0_i32_0 = arith.constant 0 : i32
    %2 = arith.cmpi ne, %1, %c0_i32_0 : i32
    scf.if %2 {
      %c0_76 = arith.constant 0 : index
      %c0_77 = arith.constant 0 : index
      %283 = vector.load %arg4[%c0_76, %c0_77] : memref<8x128xf32, #tpu.memory_space<vmem>>, vector<8x128xf32>
      %c0_78 = arith.constant 0 : index
      %c0_79 = arith.constant 0 : index
      %284 = vector.load %arg8[%c0_78, %c0_79] : memref<8x128xf32, #tpu.memory_space<vmem>>, vector<8x128xf32>
      tpu.vector_store %arg8[%c0_78, %c0_79], %283 {strides = array<i32>} : memref<8x128xf32, #tpu.memory_space<vmem>>, vector<8x128xf32>,
      %c0_80 = arith.constant 0 : index
      %c0_81 = arith.constant 0 : index
      %285 = vector.load %arg5[%c0_80, %c0_81] : memref<8x128xf32, #tpu.memory_space<vmem>>, vector<8x128xf32>
      %c0_82 = arith.constant 0 : index
      %c0_83 = arith.constant 0 : index
      %286 = vector.load %arg9[%c0_82, %c0_83] : memref<8x128xf32, #tpu.memory_space<vmem>>, vector<8x128xf32>
      tpu.vector_store %arg9[%c0_82, %c0_83], %285 {strides = array<i32>} : memref<8x128xf32, #tpu.memory_space<vmem>>, vector<8x128xf32>,
    } else {
    }
    %c0 = arith.constant 0 : index
    %c0_1 = arith.constant 0 : index
    %3 = vector.load %arg3[%c0, %c0_1] : memref<128x512xf32, #tpu.memory_space<vmem>>, vector<128x512xf32>
    %c0_2 = arith.constant 0 : index
    %c0_3 = arith.constant 0 : index
    %4 = vector.load %arg8[%c0_2, %c0_3] : memref<8x128xf32, #tpu.memory_space<vmem>>, vector<8x128xf32>
    %c0_4 = arith.constant 0 : index
    %c0_5 = arith.constant 0 : index
    %5 = vector.load %arg9[%c0_4, %c0_5] : memref<8x128xf32, #tpu.memory_space<vmem>>, vector<8x128xf32>
    %c0_i32_6 = arith.constant 0 : i32
    %6 = arith.index_cast %c0_i32_6 : i32 to index
    %c0_7 = arith.constant 0 : index
    %c0_8 = arith.constant 0 : index
    %7 = vector.load %arg2[%6, %c0_7, %c0_8] : memref<8x8x512xf32, #tpu.memory_space<vmem>>, vector<1x8x512xf32>
    %8 = vector.shape_cast %7 : vector<1x8x512xf32> to vector<8x512xf32>
    %cst = arith.constant dense<0.000000e+00> : vector<8x512xf32>
    %9 = tpu.matmul %4, %3, %cst {dimension_numbers = #tpu.dot_dimension_numbers<[1], [0], [0], [1], [0, 0, 1, 1], [], []>} : vector<8x128xf32>, vector<128x512xf32>, vector<8x512xf32> -> vector<8x512xf32>
    %10 = arith.addf %8, %9 : vector<8x512xf32>
    %11 = vector.extract_strided_slice %10 {offsets = [0, 0], sizes = [8, 128], strides = [1, 1]} : vector<8x512xf32> to vector<8x128xf32>
    %12 = arith.negf %11 : vector<8x128xf32>
    %13 = math.exp %12 : vector<8x128xf32>
    %cst_9 = arith.constant 1.000000e+00 : f32
    %14 = vector.broadcast %cst_9 : f32 to vector<8x128xf32>
    %15 = arith.addf %14, %13 : vector<8x128xf32>
    %16 = arith.divf %14, %15 : vector<8x128xf32>
    %17 = vector.extract_strided_slice %10 {offsets = [0, 128], sizes = [8, 128], strides = [1, 1]} : vector<8x512xf32> to vector<8x128xf32>
    %18 = arith.negf %17 : vector<8x128xf32>
    %19 = math.exp %18 : vector<8x128xf32>
    %cst_10 = arith.constant 1.000000e+00 : f32
    %20 = vector.broadcast %cst_10 : f32 to vector<8x128xf32>
    %21 = arith.addf %20, %19 : vector<8x128xf32>
    %22 = arith.divf %20, %21 : vector<8x128xf32>
    %23 = vector.extract_strided_slice %10 {offsets = [0, 256], sizes = [8, 128], strides = [1, 1]} : vector<8x512xf32> to vector<8x128xf32>
    %24 = math.tanh %23 : vector<8x128xf32>
    %25 = vector.extract_strided_slice %10 {offsets = [0, 384], sizes = [8, 128], strides = [1, 1]} : vector<8x512xf32> to vector<8x128xf32>
    %26 = arith.negf %25 : vector<8x128xf32>
    %27 = math.exp %26 : vector<8x128xf32>
    %cst_11 = arith.constant 1.000000e+00 : f32
    %28 = vector.broadcast %cst_11 : f32 to vector<8x128xf32>
    %29 = arith.addf %28, %27 : vector<8x128xf32>
    %30 = arith.divf %28, %29 : vector<8x128xf32>
    %31 = arith.mulf %22, %5 : vector<8x128xf32>
    %32 = arith.mulf %16, %24 : vector<8x128xf32>
    %33 = arith.addf %31, %32 : vector<8x128xf32>
    %34 = math.tanh %33 : vector<8x128xf32>
    %35 = arith.mulf %30, %34 : vector<8x128xf32>
    %36 = arith.index_cast %c0_i32_6 : i32 to index
    %c0_12 = arith.constant 0 : index
    %c0_13 = arith.constant 0 : index
    %37 = vector.load %arg6[%36, %c0_12, %c0_13] : memref<8x8x128xf32, #tpu.memory_space<vmem>>, vector<1x8x128xf32>
    %38 = vector.shape_cast %37 : vector<1x8x128xf32> to vector<8x128xf32>
    %39 = vector.shape_cast %35 : vector<8x128xf32> to vector<1x8x128xf32>
    tpu.vector_store %arg6[%36, %c0_12, %c0_13], %39 {strides = array<i32>} : memref<8x8x128xf32, #tpu.memory_space<vmem>>, vector<1x8x128xf32>,
    %c1_i32 = arith.constant 1 : i32
    %40 = arith.index_cast %c1_i32 : i32 to index
    %c0_14 = arith.constant 0 : index
    %c0_15 = arith.constant 0 : index
    %41 = vector.load %arg2[%40, %c0_14, %c0_15] : memref<8x8x512xf32, #tpu.memory_space<vmem>>, vector<1x8x512xf32>
    %42 = vector.shape_cast %41 : vector<1x8x512xf32> to vector<8x512xf32>
    %cst_16 = arith.constant dense<0.000000e+00> : vector<8x512xf32>
    %43 = tpu.matmul %35, %3, %cst_16 {dimension_numbers = #tpu.dot_dimension_numbers<[1], [0], [0], [1], [0, 0, 1, 1], [], []>} : vector<8x128xf32>, vector<128x512xf32>, vector<8x512xf32> -> vector<8x512xf32>
    %44 = arith.addf %42, %43 : vector<8x512xf32>
    %45 = vector.extract_strided_slice %44 {offsets = [0, 0], sizes = [8, 128], strides = [1, 1]} : vector<8x512xf32> to vector<8x128xf32>
    %46 = arith.negf %45 : vector<8x128xf32>
    %47 = math.exp %46 : vector<8x128xf32>
    %cst_17 = arith.constant 1.000000e+00 : f32
    %48 = vector.broadcast %cst_17 : f32 to vector<8x128xf32>
    %49 = arith.addf %48, %47 : vector<8x128xf32>
    %50 = arith.divf %48, %49 : vector<8x128xf32>
    %51 = vector.extract_strided_slice %44 {offsets = [0, 128], sizes = [8, 128], strides = [1, 1]} : vector<8x512xf32> to vector<8x128xf32>
    %52 = arith.negf %51 : vector<8x128xf32>
    %53 = math.exp %52 : vector<8x128xf32>
    %cst_18 = arith.constant 1.000000e+00 : f32
    %54 = vector.broadcast %cst_18 : f32 to vector<8x128xf32>
    %55 = arith.addf %54, %53 : vector<8x128xf32>
    %56 = arith.divf %54, %55 : vector<8x128xf32>
    %57 = vector.extract_strided_slice %44 {offsets = [0, 256], sizes = [8, 128], strides = [1, 1]} : vector<8x512xf32> to vector<8x128xf32>
    %58 = math.tanh %57 : vector<8x128xf32>
    %59 = vector.extract_strided_slice %44 {offsets = [0, 384], sizes = [8, 128], strides = [1, 1]} : vector<8x512xf32> to vector<8x128xf32>
    %60 = arith.negf %59 : vector<8x128xf32>
    %61 = math.exp %60 : vector<8x128xf32>
    %cst_19 = arith.constant 1.000000e+00 : f32
    %62 = vector.broadcast %cst_19 : f32 to vector<8x128xf32>
    %63 = arith.addf %62, %61 : vector<8x128xf32>
    %64 = arith.divf %62, %63 : vector<8x128xf32>
    %65 = arith.mulf %56, %33 : vector<8x128xf32>
    %66 = arith.mulf %50, %58 : vector<8x128xf32>
    %67 = arith.addf %65, %66 : vector<8x128xf32>
    %68 = math.tanh %67 : vector<8x128xf32>
    %69 = arith.mulf %64, %68 : vector<8x128xf32>
    %70 = arith.index_cast %c1_i32 : i32 to index
    %c0_20 = arith.constant 0 : index
    %c0_21 = arith.constant 0 : index
    %71 = vector.load %arg6[%70, %c0_20, %c0_21] : memref<8x8x128xf32, #tpu.memory_space<vmem>>, vector<1x8x128xf32>
    %72 = vector.shape_cast %71 : vector<1x8x128xf32> to vector<8x128xf32>
    %73 = vector.shape_cast %69 : vector<8x128xf32> to vector<1x8x128xf32>
    tpu.vector_store %arg6[%70, %c0_20, %c0_21], %73 {strides = array<i32>} : memref<8x8x128xf32, #tpu.memory_space<vmem>>, vector<1x8x128xf32>,
    %c2_i32 = arith.constant 2 : i32
    %74 = arith.index_cast %c2_i32 : i32 to index
    %c0_22 = arith.constant 0 : index
    %c0_23 = arith.constant 0 : index
    %75 = vector.load %arg2[%74, %c0_22, %c0_23] : memref<8x8x512xf32, #tpu.memory_space<vmem>>, vector<1x8x512xf32>
    %76 = vector.shape_cast %75 : vector<1x8x512xf32> to vector<8x512xf32>
    %cst_24 = arith.constant dense<0.000000e+00> : vector<8x512xf32>
    %77 = tpu.matmul %69, %3, %cst_24 {dimension_numbers = #tpu.dot_dimension_numbers<[1], [0], [0], [1], [0, 0, 1, 1], [], []>} : vector<8x128xf32>, vector<128x512xf32>, vector<8x512xf32> -> vector<8x512xf32>
    %78 = arith.addf %76, %77 : vector<8x512xf32>
    %79 = vector.extract_strided_slice %78 {offsets = [0, 0], sizes = [8, 128], strides = [1, 1]} : vector<8x512xf32> to vector<8x128xf32>
    %80 = arith.negf %79 : vector<8x128xf32>
    %81 = math.exp %80 : vector<8x128xf32>
    %cst_25 = arith.constant 1.000000e+00 : f32
    %82 = vector.broadcast %cst_25 : f32 to vector<8x128xf32>
    %83 = arith.addf %82, %81 : vector<8x128xf32>
    %84 = arith.divf %82, %83 : vector<8x128xf32>
    %85 = vector.extract_strided_slice %78 {offsets = [0, 128], sizes = [8, 128], strides = [1, 1]} : vector<8x512xf32> to vector<8x128xf32>
    %86 = arith.negf %85 : vector<8x128xf32>
    %87 = math.exp %86 : vector<8x128xf32>
    %cst_26 = arith.constant 1.000000e+00 : f32
    %88 = vector.broadcast %cst_26 : f32 to vector<8x128xf32>
    %89 = arith.addf %88, %87 : vector<8x128xf32>
    %90 = arith.divf %88, %89 : vector<8x128xf32>
    %91 = vector.extract_strided_slice %78 {offsets = [0, 256], sizes = [8, 128], strides = [1, 1]} : vector<8x512xf32> to vector<8x128xf32>
    %92 = math.tanh %91 : vector<8x128xf32>
    %93 = vector.extract_strided_slice %78 {offsets = [0, 384], sizes = [8, 128], strides = [1, 1]} : vector<8x512xf32> to vector<8x128xf32>
    %94 = arith.negf %93 : vector<8x128xf32>
    %95 = math.exp %94 : vector<8x128xf32>
    %cst_27 = arith.constant 1.000000e+00 : f32
    %96 = vector.broadcast %cst_27 : f32 to vector<8x128xf32>
    %97 = arith.addf %96, %95 : vector<8x128xf32>
    %98 = arith.divf %96, %97 : vector<8x128xf32>
    %99 = arith.mulf %90, %67 : vector<8x128xf32>
    %100 = arith.mulf %84, %92 : vector<8x128xf32>
    %101 = arith.addf %99, %100 : vector<8x128xf32>
    %102 = math.tanh %101 : vector<8x128xf32>
    %103 = arith.mulf %98, %102 : vector<8x128xf32>
    %104 = arith.index_cast %c2_i32 : i32 to index
    %c0_28 = arith.constant 0 : index
    %c0_29 = arith.constant 0 : index
    %105 = vector.load %arg6[%104, %c0_28, %c0_29] : memref<8x8x128xf32, #tpu.memory_space<vmem>>, vector<1x8x128xf32>
    %106 = vector.shape_cast %105 : vector<1x8x128xf32> to vector<8x128xf32>
    %107 = vector.shape_cast %103 : vector<8x128xf32> to vector<1x8x128xf32>
    tpu.vector_store %arg6[%104, %c0_28, %c0_29], %107 {strides = array<i32>} : memref<8x8x128xf32, #tpu.memory_space<vmem>>, vector<1x8x128xf32>,
    %c3_i32 = arith.constant 3 : i32
    %108 = arith.index_cast %c3_i32 : i32 to index
    %c0_30 = arith.constant 0 : index
    %c0_31 = arith.constant 0 : index
    %109 = vector.load %arg2[%108, %c0_30, %c0_31] : memref<8x8x512xf32, #tpu.memory_space<vmem>>, vector<1x8x512xf32>
    %110 = vector.shape_cast %109 : vector<1x8x512xf32> to vector<8x512xf32>
    %cst_32 = arith.constant dense<0.000000e+00> : vector<8x512xf32>
    %111 = tpu.matmul %103, %3, %cst_32 {dimension_numbers = #tpu.dot_dimension_numbers<[1], [0], [0], [1], [0, 0, 1, 1], [], []>} : vector<8x128xf32>, vector<128x512xf32>, vector<8x512xf32> -> vector<8x512xf32>
    %112 = arith.addf %110, %111 : vector<8x512xf32>
    %113 = vector.extract_strided_slice %112 {offsets = [0, 0], sizes = [8, 128], strides = [1, 1]} : vector<8x512xf32> to vector<8x128xf32>
    %114 = arith.negf %113 : vector<8x128xf32>
    %115 = math.exp %114 : vector<8x128xf32>
    %cst_33 = arith.constant 1.000000e+00 : f32
    %116 = vector.broadcast %cst_33 : f32 to vector<8x128xf32>
    %117 = arith.addf %116, %115 : vector<8x128xf32>
    %118 = arith.divf %116, %117 : vector<8x128xf32>
    %119 = vector.extract_strided_slice %112 {offsets = [0, 128], sizes = [8, 128], strides = [1, 1]} : vector<8x512xf32> to vector<8x128xf32>
    %120 = arith.negf %119 : vector<8x128xf32>
    %121 = math.exp %120 : vector<8x128xf32>
    %cst_34 = arith.constant 1.000000e+00 : f32
    %122 = vector.broadcast %cst_34 : f32 to vector<8x128xf32>
    %123 = arith.addf %122, %121 : vector<8x128xf32>
    %124 = arith.divf %122, %123 : vector<8x128xf32>
    %125 = vector.extract_strided_slice %112 {offsets = [0, 256], sizes = [8, 128], strides = [1, 1]} : vector<8x512xf32> to vector<8x128xf32>
    %126 = math.tanh %125 : vector<8x128xf32>
    %127 = vector.extract_strided_slice %112 {offsets = [0, 384], sizes = [8, 128], strides = [1, 1]} : vector<8x512xf32> to vector<8x128xf32>
    %128 = arith.negf %127 : vector<8x128xf32>
    %129 = math.exp %128 : vector<8x128xf32>
    %cst_35 = arith.constant 1.000000e+00 : f32
    %130 = vector.broadcast %cst_35 : f32 to vector<8x128xf32>
    %131 = arith.addf %130, %129 : vector<8x128xf32>
    %132 = arith.divf %130, %131 : vector<8x128xf32>
    %133 = arith.mulf %124, %101 : vector<8x128xf32>
    %134 = arith.mulf %118, %126 : vector<8x128xf32>
    %135 = arith.addf %133, %134 : vector<8x128xf32>
    %136 = math.tanh %135 : vector<8x128xf32>
    %137 = arith.mulf %132, %136 : vector<8x128xf32>
    %138 = arith.index_cast %c3_i32 : i32 to index
    %c0_36 = arith.constant 0 : index
    %c0_37 = arith.constant 0 : index
    %139 = vector.load %arg6[%138, %c0_36, %c0_37] : memref<8x8x128xf32, #tpu.memory_space<vmem>>, vector<1x8x128xf32>
    %140 = vector.shape_cast %139 : vector<1x8x128xf32> to vector<8x128xf32>
    %141 = vector.shape_cast %137 : vector<8x128xf32> to vector<1x8x128xf32>
    tpu.vector_store %arg6[%138, %c0_36, %c0_37], %141 {strides = array<i32>} : memref<8x8x128xf32, #tpu.memory_space<vmem>>, vector<1x8x128xf32>,
    %c4_i32 = arith.constant 4 : i32
    %142 = arith.index_cast %c4_i32 : i32 to index
    %c0_38 = arith.constant 0 : index
    %c0_39 = arith.constant 0 : index
    %143 = vector.load %arg2[%142, %c0_38, %c0_39] : memref<8x8x512xf32, #tpu.memory_space<vmem>>, vector<1x8x512xf32>
    %144 = vector.shape_cast %143 : vector<1x8x512xf32> to vector<8x512xf32>
    %cst_40 = arith.constant dense<0.000000e+00> : vector<8x512xf32>
    %145 = tpu.matmul %137, %3, %cst_40 {dimension_numbers = #tpu.dot_dimension_numbers<[1], [0], [0], [1], [0, 0, 1, 1], [], []>} : vector<8x128xf32>, vector<128x512xf32>, vector<8x512xf32> -> vector<8x512xf32>
    %146 = arith.addf %144, %145 : vector<8x512xf32>
    %147 = vector.extract_strided_slice %146 {offsets = [0, 0], sizes = [8, 128], strides = [1, 1]} : vector<8x512xf32> to vector<8x128xf32>
    %148 = arith.negf %147 : vector<8x128xf32>
    %149 = math.exp %148 : vector<8x128xf32>
    %cst_41 = arith.constant 1.000000e+00 : f32
    %150 = vector.broadcast %cst_41 : f32 to vector<8x128xf32>
    %151 = arith.addf %150, %149 : vector<8x128xf32>
    %152 = arith.divf %150, %151 : vector<8x128xf32>
    %153 = vector.extract_strided_slice %146 {offsets = [0, 128], sizes = [8, 128], strides = [1, 1]} : vector<8x512xf32> to vector<8x128xf32>
    %154 = arith.negf %153 : vector<8x128xf32>
    %155 = math.exp %154 : vector<8x128xf32>
    %cst_42 = arith.constant 1.000000e+00 : f32
    %156 = vector.broadcast %cst_42 : f32 to vector<8x128xf32>
    %157 = arith.addf %156, %155 : vector<8x128xf32>
    %158 = arith.divf %156, %157 : vector<8x128xf32>
    %159 = vector.extract_strided_slice %146 {offsets = [0, 256], sizes = [8, 128], strides = [1, 1]} : vector<8x512xf32> to vector<8x128xf32>
    %160 = math.tanh %159 : vector<8x128xf32>
    %161 = vector.extract_strided_slice %146 {offsets = [0, 384], sizes = [8, 128], strides = [1, 1]} : vector<8x512xf32> to vector<8x128xf32>
    %162 = arith.negf %161 : vector<8x128xf32>
    %163 = math.exp %162 : vector<8x128xf32>
    %cst_43 = arith.constant 1.000000e+00 : f32
    %164 = vector.broadcast %cst_43 : f32 to vector<8x128xf32>
    %165 = arith.addf %164, %163 : vector<8x128xf32>
    %166 = arith.divf %164, %165 : vector<8x128xf32>
    %167 = arith.mulf %158, %135 : vector<8x128xf32>
    %168 = arith.mulf %152, %160 : vector<8x128xf32>
    %169 = arith.addf %167, %168 : vector<8x128xf32>
    %170 = math.tanh %169 : vector<8x128xf32>
    %171 = arith.mulf %166, %170 : vector<8x128xf32>
    %172 = arith.index_cast %c4_i32 : i32 to index
    %c0_44 = arith.constant 0 : index
    %c0_45 = arith.constant 0 : index
    %173 = vector.load %arg6[%172, %c0_44, %c0_45] : memref<8x8x128xf32, #tpu.memory_space<vmem>>, vector<1x8x128xf32>
    %174 = vector.shape_cast %173 : vector<1x8x128xf32> to vector<8x128xf32>
    %175 = vector.shape_cast %171 : vector<8x128xf32> to vector<1x8x128xf32>
    tpu.vector_store %arg6[%172, %c0_44, %c0_45], %175 {strides = array<i32>} : memref<8x8x128xf32, #tpu.memory_space<vmem>>, vector<1x8x128xf32>,
    %c5_i32 = arith.constant 5 : i32
    %176 = arith.index_cast %c5_i32 : i32 to index
    %c0_46 = arith.constant 0 : index
    %c0_47 = arith.constant 0 : index
    %177 = vector.load %arg2[%176, %c0_46, %c0_47] : memref<8x8x512xf32, #tpu.memory_space<vmem>>, vector<1x8x512xf32>
    %178 = vector.shape_cast %177 : vector<1x8x512xf32> to vector<8x512xf32>
    %cst_48 = arith.constant dense<0.000000e+00> : vector<8x512xf32>
    %179 = tpu.matmul %171, %3, %cst_48 {dimension_numbers = #tpu.dot_dimension_numbers<[1], [0], [0], [1], [0, 0, 1, 1], [], []>} : vector<8x128xf32>, vector<128x512xf32>, vector<8x512xf32> -> vector<8x512xf32>
    %180 = arith.addf %178, %179 : vector<8x512xf32>
    %181 = vector.extract_strided_slice %180 {offsets = [0, 0], sizes = [8, 128], strides = [1, 1]} : vector<8x512xf32> to vector<8x128xf32>
    %182 = arith.negf %181 : vector<8x128xf32>
    %183 = math.exp %182 : vector<8x128xf32>
    %cst_49 = arith.constant 1.000000e+00 : f32
    %184 = vector.broadcast %cst_49 : f32 to vector<8x128xf32>
    %185 = arith.addf %184, %183 : vector<8x128xf32>
    %186 = arith.divf %184, %185 : vector<8x128xf32>
    %187 = vector.extract_strided_slice %180 {offsets = [0, 128], sizes = [8, 128], strides = [1, 1]} : vector<8x512xf32> to vector<8x128xf32>
    %188 = arith.negf %187 : vector<8x128xf32>
    %189 = math.exp %188 : vector<8x128xf32>
    %cst_50 = arith.constant 1.000000e+00 : f32
    %190 = vector.broadcast %cst_50 : f32 to vector<8x128xf32>
    %191 = arith.addf %190, %189 : vector<8x128xf32>
    %192 = arith.divf %190, %191 : vector<8x128xf32>
    %193 = vector.extract_strided_slice %180 {offsets = [0, 256], sizes = [8, 128], strides = [1, 1]} : vector<8x512xf32> to vector<8x128xf32>
    %194 = math.tanh %193 : vector<8x128xf32>
    %195 = vector.extract_strided_slice %180 {offsets = [0, 384], sizes = [8, 128], strides = [1, 1]} : vector<8x512xf32> to vector<8x128xf32>
    %196 = arith.negf %195 : vector<8x128xf32>
    %197 = math.exp %196 : vector<8x128xf32>
    %cst_51 = arith.constant 1.000000e+00 : f32
    %198 = vector.broadcast %cst_51 : f32 to vector<8x128xf32>
    %199 = arith.addf %198, %197 : vector<8x128xf32>
    %200 = arith.divf %198, %199 : vector<8x128xf32>
    %201 = arith.mulf %192, %169 : vector<8x128xf32>
    %202 = arith.mulf %186, %194 : vector<8x128xf32>
    %203 = arith.addf %201, %202 : vector<8x128xf32>
    %204 = math.tanh %203 : vector<8x128xf32>
    %205 = arith.mulf %200, %204 : vector<8x128xf32>
    %206 = arith.index_cast %c5_i32 : i32 to index
    %c0_52 = arith.constant 0 : index
    %c0_53 = arith.constant 0 : index
    %207 = vector.load %arg6[%206, %c0_52, %c0_53] : memref<8x8x128xf32, #tpu.memory_space<vmem>>, vector<1x8x128xf32>
    %208 = vector.shape_cast %207 : vector<1x8x128xf32> to vector<8x128xf32>
    %209 = vector.shape_cast %205 : vector<8x128xf32> to vector<1x8x128xf32>
    tpu.vector_store %arg6[%206, %c0_52, %c0_53], %209 {strides = array<i32>} : memref<8x8x128xf32, #tpu.memory_space<vmem>>, vector<1x8x128xf32>,
    %c6_i32 = arith.constant 6 : i32
    %210 = arith.index_cast %c6_i32 : i32 to index
    %c0_54 = arith.constant 0 : index
    %c0_55 = arith.constant 0 : index
    %211 = vector.load %arg2[%210, %c0_54, %c0_55] : memref<8x8x512xf32, #tpu.memory_space<vmem>>, vector<1x8x512xf32>
    %212 = vector.shape_cast %211 : vector<1x8x512xf32> to vector<8x512xf32>
    %cst_56 = arith.constant dense<0.000000e+00> : vector<8x512xf32>
    %213 = tpu.matmul %205, %3, %cst_56 {dimension_numbers = #tpu.dot_dimension_numbers<[1], [0], [0], [1], [0, 0, 1, 1], [], []>} : vector<8x128xf32>, vector<128x512xf32>, vector<8x512xf32> -> vector<8x512xf32>
    %214 = arith.addf %212, %213 : vector<8x512xf32>
    %215 = vector.extract_strided_slice %214 {offsets = [0, 0], sizes = [8, 128], strides = [1, 1]} : vector<8x512xf32> to vector<8x128xf32>
    %216 = arith.negf %215 : vector<8x128xf32>
    %217 = math.exp %216 : vector<8x128xf32>
    %cst_57 = arith.constant 1.000000e+00 : f32
    %218 = vector.broadcast %cst_57 : f32 to vector<8x128xf32>
    %219 = arith.addf %218, %217 : vector<8x128xf32>
    %220 = arith.divf %218, %219 : vector<8x128xf32>
    %221 = vector.extract_strided_slice %214 {offsets = [0, 128], sizes = [8, 128], strides = [1, 1]} : vector<8x512xf32> to vector<8x128xf32>
    %222 = arith.negf %221 : vector<8x128xf32>
    %223 = math.exp %222 : vector<8x128xf32>
    %cst_58 = arith.constant 1.000000e+00 : f32
    %224 = vector.broadcast %cst_58 : f32 to vector<8x128xf32>
    %225 = arith.addf %224, %223 : vector<8x128xf32>
    %226 = arith.divf %224, %225 : vector<8x128xf32>
    %227 = vector.extract_strided_slice %214 {offsets = [0, 256], sizes = [8, 128], strides = [1, 1]} : vector<8x512xf32> to vector<8x128xf32>
    %228 = math.tanh %227 : vector<8x128xf32>
    %229 = vector.extract_strided_slice %214 {offsets = [0, 384], sizes = [8, 128], strides = [1, 1]} : vector<8x512xf32> to vector<8x128xf32>
    %230 = arith.negf %229 : vector<8x128xf32>
    %231 = math.exp %230 : vector<8x128xf32>
    %cst_59 = arith.constant 1.000000e+00 : f32
    %232 = vector.broadcast %cst_59 : f32 to vector<8x128xf32>
    %233 = arith.addf %232, %231 : vector<8x128xf32>
    %234 = arith.divf %232, %233 : vector<8x128xf32>
    %235 = arith.mulf %226, %203 : vector<8x128xf32>
    %236 = arith.mulf %220, %228 : vector<8x128xf32>
    %237 = arith.addf %235, %236 : vector<8x128xf32>
    %238 = math.tanh %237 : vector<8x128xf32>
    %239 = arith.mulf %234, %238 : vector<8x128xf32>
    %240 = arith.index_cast %c6_i32 : i32 to index
    %c0_60 = arith.constant 0 : index
    %c0_61 = arith.constant 0 : index
    %241 = vector.load %arg6[%240, %c0_60, %c0_61] : memref<8x8x128xf32, #tpu.memory_space<vmem>>, vector<1x8x128xf32>
    %242 = vector.shape_cast %241 : vector<1x8x128xf32> to vector<8x128xf32>
    %243 = vector.shape_cast %239 : vector<8x128xf32> to vector<1x8x128xf32>
    tpu.vector_store %arg6[%240, %c0_60, %c0_61], %243 {strides = array<i32>} : memref<8x8x128xf32, #tpu.memory_space<vmem>>, vector<1x8x128xf32>,
    %c7_i32 = arith.constant 7 : i32
    %244 = arith.index_cast %c7_i32 : i32 to index
    %c0_62 = arith.constant 0 : index
    %c0_63 = arith.constant 0 : index
    %245 = vector.load %arg2[%244, %c0_62, %c0_63] : memref<8x8x512xf32, #tpu.memory_space<vmem>>, vector<1x8x512xf32>
    %246 = vector.shape_cast %245 : vector<1x8x512xf32> to vector<8x512xf32>
    %cst_64 = arith.constant dense<0.000000e+00> : vector<8x512xf32>
    %247 = tpu.matmul %239, %3, %cst_64 {dimension_numbers = #tpu.dot_dimension_numbers<[1], [0], [0], [1], [0, 0, 1, 1], [], []>} : vector<8x128xf32>, vector<128x512xf32>, vector<8x512xf32> -> vector<8x512xf32>
    %248 = arith.addf %246, %247 : vector<8x512xf32>
    %249 = vector.extract_strided_slice %248 {offsets = [0, 0], sizes = [8, 128], strides = [1, 1]} : vector<8x512xf32> to vector<8x128xf32>
    %250 = arith.negf %249 : vector<8x128xf32>
    %251 = math.exp %250 : vector<8x128xf32>
    %cst_65 = arith.constant 1.000000e+00 : f32
    %252 = vector.broadcast %cst_65 : f32 to vector<8x128xf32>
    %253 = arith.addf %252, %251 : vector<8x128xf32>
    %254 = arith.divf %252, %253 : vector<8x128xf32>
    %255 = vector.extract_strided_slice %248 {offsets = [0, 128], sizes = [8, 128], strides = [1, 1]} : vector<8x512xf32> to vector<8x128xf32>
    %256 = arith.negf %255 : vector<8x128xf32>
    %257 = math.exp %256 : vector<8x128xf32>
    %cst_66 = arith.constant 1.000000e+00 : f32
    %258 = vector.broadcast %cst_66 : f32 to vector<8x128xf32>
    %259 = arith.addf %258, %257 : vector<8x128xf32>
    %260 = arith.divf %258, %259 : vector<8x128xf32>
    %261 = vector.extract_strided_slice %248 {offsets = [0, 256], sizes = [8, 128], strides = [1, 1]} : vector<8x512xf32> to vector<8x128xf32>
    %262 = math.tanh %261 : vector<8x128xf32>
    %263 = vector.extract_strided_slice %248 {offsets = [0, 384], sizes = [8, 128], strides = [1, 1]} : vector<8x512xf32> to vector<8x128xf32>
    %264 = arith.negf %263 : vector<8x128xf32>
    %265 = math.exp %264 : vector<8x128xf32>
    %cst_67 = arith.constant 1.000000e+00 : f32
    %266 = vector.broadcast %cst_67 : f32 to vector<8x128xf32>
    %267 = arith.addf %266, %265 : vector<8x128xf32>
    %268 = arith.divf %266, %267 : vector<8x128xf32>
    %269 = arith.mulf %260, %237 : vector<8x128xf32>
    %270 = arith.mulf %254, %262 : vector<8x128xf32>
    %271 = arith.addf %269, %270 : vector<8x128xf32>
    %272 = math.tanh %271 : vector<8x128xf32>
    %273 = arith.mulf %268, %272 : vector<8x128xf32>
    %274 = arith.index_cast %c7_i32 : i32 to index
    %c0_68 = arith.constant 0 : index
    %c0_69 = arith.constant 0 : index
    %275 = vector.load %arg6[%274, %c0_68, %c0_69] : memref<8x8x128xf32, #tpu.memory_space<vmem>>, vector<1x8x128xf32>
    %276 = vector.shape_cast %275 : vector<1x8x128xf32> to vector<8x128xf32>
    %277 = vector.shape_cast %273 : vector<8x128xf32> to vector<1x8x128xf32>
    tpu.vector_store %arg6[%274, %c0_68, %c0_69], %277 {strides = array<i32>} : memref<8x8x128xf32, #tpu.memory_space<vmem>>, vector<1x8x128xf32>,
    %c8_i32 = arith.constant 8 : i32
    %c0_70 = arith.constant 0 : index
    %c0_71 = arith.constant 0 : index
    %278 = vector.load %arg8[%c0_70, %c0_71] : memref<8x128xf32, #tpu.memory_space<vmem>>, vector<8x128xf32>
    tpu.vector_store %arg8[%c0_70, %c0_71], %273 {strides = array<i32>} : memref<8x128xf32, #tpu.memory_space<vmem>>, vector<8x128xf32>,
    %c0_72 = arith.constant 0 : index
    %c0_73 = arith.constant 0 : index
    %279 = vector.load %arg9[%c0_72, %c0_73] : memref<8x128xf32, #tpu.memory_space<vmem>>, vector<8x128xf32>
    tpu.vector_store %arg9[%c0_72, %c0_73], %271 {strides = array<i32>} : memref<8x128xf32, #tpu.memory_space<vmem>>, vector<8x128xf32>,
    %c0_i32_74 = arith.constant 0 : i32
    %280 = arith.cmpi eq, %arg1, %c0_i32_74 : i32
    %281 = arith.extui %280 : i1 to i32
    %c0_i32_75 = arith.constant 0 : i32
    %282 = arith.cmpi ne, %281, %c0_i32_75 : i32
    scf.if %282 {
      %c0_76 = arith.constant 0 : index
      %c0_77 = arith.constant 0 : index
      %283 = vector.load %arg7[%c0_76, %c0_77] : memref<8x128xf32, #tpu.memory_space<vmem>>, vector<8x128xf32>
      tpu.vector_store %arg7[%c0_76, %c0_77], %271 {strides = array<i32>} : memref<8x128xf32, #tpu.memory_space<vmem>>, vector<8x128xf32>,
    } else {
    }
    return
  }
  func.func @transform_0(%arg0: i32, %arg1: i32) -> (i32, i32, i32) {
    %c0_i32 = arith.constant 0 : i32
    %c0_i32_0 = arith.constant 0 : i32
    return %arg1, %arg0, %c0_i32 : i32, i32, i32
  }
  func.func @transform_1(%arg0: i32, %arg1: i32) -> (i32, i32) {
    %c0_i32 = arith.constant 0 : i32
    %c0_i32_0 = arith.constant 0 : i32
    %c0_i32_1 = arith.constant 0 : i32
    return %c0_i32, %c0_i32_0 : i32, i32
  }
  func.func @transform_2(%arg0: i32, %arg1: i32) -> (i32, i32) {
    %c0_i32 = arith.constant 0 : i32
    %c0_i32_0 = arith.constant 0 : i32
    return %arg0, %c0_i32 : i32, i32
  }
  func.func @transform_3(%arg0: i32, %arg1: i32) -> (i32, i32) {
    %c0_i32 = arith.constant 0 : i32
    %c0_i32_0 = arith.constant 0 : i32
    return %arg0, %c0_i32 : i32, i32
  }
  func.func @transform_4(%arg0: i32, %arg1: i32) -> (i32, i32, i32) {
    %c0_i32 = arith.constant 0 : i32
    %c0_i32_0 = arith.constant 0 : i32
    return %arg1, %arg0, %c0_i32 : i32, i32, i32
  }
  func.func @transform_5(%arg0: i32, %arg1: i32) -> (i32, i32) {
    %c0_i32 = arith.constant 0 : i32
    %c0_i32_0 = arith.constant 0 : i32
    return %arg0, %c0_i32 : i32, i32
  }
}

</mosaic_0001>

<bundles_post_ra>
// kernel: tpu_custom_call.1
= control target key start
LH: loop header
LB: loop body
LE: loop exit
PB: predicated region body
PF: predicated region fallthrough
CT: control target
= control target key end

     0   :  { %11 = vsyncpa [#allocation5], 0  ;;  %s2848_s0 = inlined_call_operand.hbm [shape: f32[8,8,512], index: 0, kind: input, shape index: {}]   ;;  %s2849_s1 = inlined_call_operand.hbm [shape: f32[128,512], index: 1, kind: input, shape index: {}]   ;;  %s2850_s2 = inlined_call_operand.hbm [shape: f32[8,128], index: 2, kind: input, shape index: {}]   ;;  %s2851_s3 = inlined_call_operand.vmem [shape: f32[8,128], index: 3, kind: input, shape index: {}]   ;;  %s2852_s4 = inlined_call_operand.hbm [shape: f32[8,8,128], index: 4, kind: output, shape index: {0}]   ;;  %s2853_s5 = inlined_call_operand.hbm [shape: f32[8,128], index: 5, kind: output, shape index: {1}]  }
   0x1   :  { %12 = vsyncpa [#allocation8], 0 }
   0x2   :  { %13 = vsyncpa [#allocation6], 0 }
   0x3   :  { %14 = vsyncpa [#allocation12], 0  ;;  %s2378_s18 = smov [#allocation7]   ;;  %s2379_s20 = smov [#allocation4]  }
   0x4   :  { %s32_s19 = sshll.u32 %s2378_s18, 4  ;;  %s20_s21 = sshll.u32 %s2379_s20, 4  ;;  %s33_s19 = int_to_ptr.vmem [resolvable:$true] %s32_s19  ;;  %s2418_s21 = int_to_ptr.vmem [resolvable:$true] %s20_s21 }
   0x5   :  { %s2260_s24 = scalar_lea.hbm %s2849_s1, 8192 }
   0x6   :  { %p2261_p0 = scmp.ne.s32.totalorder %s2849_s1, %s2260_s24  ;;  %p2264_p1 = scmp.lt.u32.totalorder %s2260_s24, %s2849_s1 }
   0x8   :  { %p2266_p2 = pnand %p2264_p1, %p2261_p0 }
   0xa   :  { %2269 = shalt.err (!%p2266_p2)
}
   0xb   :  { %s2270_s29 = scalar_lea.vmem %s33_s19, 8192  ;;  %p2275_p4 = scmp.lt.s32.totalorder %s33_s19, %s33_s19 }
   0xc   :  { %p2271_p3 = scmp.ne.s32.totalorder %s33_s19, %s2270_s29  ;;  %p2276_p5 = scmp.lt.s32.totalorder %s2270_s29, %s2270_s29 }
   0xe   :  { %p2277_p6 = por %p2276_p5, %p2275_p4 }
  0x10   :  { %p2278_p7 = pnand %p2277_p6, %p2271_p3 }
  0x12   :  { %2281 = shalt.err (!%p2278_p7)
}
  0x13   :  { %s2380_s30 = smov 512   ;;  %s2381_s6 = smov 32  }
  0x14   :  { %38 = dma.hbm_to_vmem [thread:$0]  %s2849_s1, 8192, %s33_s19, [#allocation8], %s2380_s30, %s2380_s30, %s2381_s6  }
  0x15   :  { %s2282_s11 = scalar_lea.hbm %s2848_s0, 4096 }
  0x16   :  { %p2283_p8 = scmp.ne.s32.totalorder %s2848_s0, %s2282_s11  ;;  %p2286_p9 = scmp.lt.u32.totalorder %s2282_s11, %s2848_s0 }
  0x18   :  { %p2288_p10 = pnand %p2286_p9, %p2283_p8 }
  0x1a   :  { %2291 = shalt.err (!%p2288_p10)
}
  0x1b   :  { %s2292_s16 = scalar_lea.vmem %s2418_s21, 4096  ;;  %p2297_p12 = scmp.lt.s32.totalorder %s2418_s21, %s2418_s21 }
  0x1c   :  { %p2293_p11 = scmp.ne.s32.totalorder %s2418_s21, %s2292_s16  ;;  %p2298_p13 = scmp.lt.s32.totalorder %s2292_s16, %s2292_s16 }
  0x1e   :  { %p2299_p0 = por %p2298_p13, %p2297_p12 }
  0x20   :  { %p2300_p1 = pnand %p2299_p0, %p2293_p11 }
  0x22   :  { %2303 = shalt.err (!%p2300_p1)
}
  0x23   :  { %26 = dma.hbm_to_vmem [thread:$0]  %s2848_s0, 4096, %s2418_s21, [#allocation5], %s2380_s30, %s2380_s30, %s2381_s6  }
  0x24   :  { %s2382_s18 = smov [#allocation9]   ;;  %s2304_s23 = scalar_lea.hbm %s2850_s2, 128 }
  0x25   :  { %s45_s19 = sshll.u32 %s2382_s18, 4  ;;  %p2305_p2 = scmp.ne.s32.totalorder %s2850_s2, %s2304_s23  ;;  %s46_s19 = int_to_ptr.vmem [resolvable:$true] %s45_s19 }
  0x26   :  { %p2308_p3 = scmp.lt.u32.totalorder %s2304_s23, %s2850_s2 }
  0x28   :  { %p2310_p4 = pnand %p2308_p3, %p2305_p2 }
  0x2a   :  { %2313 = shalt.err (!%p2310_p4)
}
  0x2b   :  { %s2314_s28 = scalar_lea.vmem %s46_s19, 128  ;;  %p2319_p6 = scmp.lt.s32.totalorder %s46_s19, %s46_s19 }
  0x2c   :  { %p2315_p5 = scmp.ne.s32.totalorder %s46_s19, %s2314_s28  ;;  %p2320_p7 = scmp.lt.s32.totalorder %s2314_s28, %s2314_s28 }
  0x2e   :  { %p2321_p8 = por %p2320_p7, %p2319_p6 }
  0x30   :  { %p2322_p9 = pnand %p2321_p8, %p2315_p5 }
  0x32   :  { %2325 = shalt.err (!%p2322_p9)
}
  0x33   :  { %48 = dma.hbm_to_vmem [thread:$0]  %s2850_s2, 128, %s46_s19, [#allocation8]  }
  0x34   :  { %2370 = dma.done.wait [#allocation5], 4096  }
  0x35   :  { %2371 = vsyncadd [#allocation5], 4294963200 }
  0x36   :  { %2372 = dma.done.wait [#allocation8], 8320  }
  0x37   :  { %2373 = vsyncadd [#allocation8], 4294958976  ;;  %v2383_v0 = vmov 0.0   ;;  %v69_v1 = vld [vmem:[#allocation7 + $0x8] sm:$0xff]  ;;  %v68_v3 = vld [vmem:[#allocation7] sm:$0xff] }
  0x38   :  { %202 = vmatprep.mubr.f32.mxu0 %v2383_v0  ;;  %273 = vmatprep.mubr.f32.mxu1 %v2383_v0  ;;  %v73_v2 = vld [vmem:[#allocation7 + $0x28] sm:$0xff]  ;;  %v72_v5 = vld [vmem:[#allocation7 + $0x20] sm:$0xff]  ;;  %v71_v19 = vld [vmem:[#allocation7 + $0x18] sm:$0xff] }
  0x39   :  { %v2463_v4 = vpack.c.bf16 %v73_v2, %v69_v1  ;;  %v77_v6 = vld [vmem:[#allocation7 + $0x48] sm:$0xff]  ;;  %v2465_v8 = vpack.c.bf16 %v72_v5, %v68_v3  ;;  %v76_v10 = vld [vmem:[#allocation7 + $0x40] sm:$0xff]  ;;  %v75_v20 = vld [vmem:[#allocation7 + $0x38] sm:$0xff] }
  0x3a   :  { %v81_v7 = vld [vmem:[#allocation7 + $0x68] sm:$0xff]  ;;  %v80_v11 = vld [vmem:[#allocation7 + $0x60] sm:$0xff]  ;;  %v2476_v22 = vpack.c.bf16 %v75_v20, %v71_v19  ;;  %v70_v23 = vld [vmem:[#allocation7 + $0x10] sm:$0xff] }
  0x3b   :  { %v2467_v9 = vpack.c.bf16 %v81_v7, %v77_v6  ;;  %v85_v12 = vld [vmem:[#allocation7 + $0x88] sm:$0xff]  ;;  %1611 = vmatprep.subr.bf16.mxu0 %v2463_v4  ;;  %v2471_v14 = vpack.c.bf16 %v80_v11, %v76_v10  ;;  %v84_v15 = vld [vmem:[#allocation7 + $0x80] sm:$0xff]  ;;  %v74_v24 = vld [vmem:[#allocation7 + $0x30] sm:$0xff] }
  0x3c   :  { %v89_v13 = vld [vmem:[#allocation7 + $0xa8] sm:$0xff]  ;;  %1613 = vmatpush1.bf16.msra.mxu0 %v2465_v8  ;;  %v88_v16 = vld [vmem:[#allocation7 + $0xa0] sm:$0xff]  ;;  %v2478_v25 = vpack.c.bf16 %v74_v24, %v70_v23  ;;  %1643 = vmatprep.subr.bf16.mxu1 %v2476_v22  ;;  %v79_v27 = vld [vmem:[#allocation7 + $0x58] sm:$0xff] }
  0x3d   :  { %1615 = vmatprep.subr.bf16.mxu0 %v2467_v9  ;;  %v2474_v17 = vpack.c.bf16 %v89_v13, %v85_v12  ;;  %v93_v18 = vld [vmem:[#allocation7 + $0xc8] sm:$0xff]  ;;  %v2481_v26 = vpack.c.bf16 %v88_v16, %v84_v15  ;;  %v83_v28 = vld [vmem:[#allocation7 + $0x78] sm:$0xff]  ;;  %v78_v29 = vld [vmem:[#allocation7 + $0x50] sm:$0xff] }
  0x3e   :  { %v97_v21 = vld [vmem:[#allocation7 + $0xe8] sm:$0xff]  ;;  %v92_v31 = vld [vmem:[#allocation7 + $0xc0] sm:$0xff]  ;;  %1645 = vmatpush1.bf16.msra.mxu1 %v2478_v25  ;;  %v2488_v33 = vpack.c.bf16 %v83_v28, %v79_v27  ;;  %v82_v34 = vld [vmem:[#allocation7 + $0x70] sm:$0xff] }
  0x3f   :  { %v2485_v30 = vpack.c.bf16 %v97_v21, %v93_v18  ;;  %v96_v32 = vld [vmem:[#allocation7 + $0xe0] sm:$0xff]  ;;  %v101_v35 = vld [vmem:[#allocation7 + $0x108] sm:$0xff]  ;;  %v2490_v37 = vpack.c.bf16 %v82_v34, %v78_v29  ;;  %v87_v38 = vld [vmem:[#allocation7 + $0x98] sm:$0xff] }
  0x40   :  { %1617 = vmatpush1.bf16.msra.mxu0 %v2471_v14  ;;  %v105_v36 = vld [vmem:[#allocation7 + $0x128] sm:$0xff]  ;;  %1647 = vmatprep.subr.bf16.mxu1 %v2488_v33  ;;  %v91_v39 = vld [vmem:[#allocation7 + $0xb8] sm:$0xff]  ;;  %v86_v40 = vld [vmem:[#allocation7 + $0x90] sm:$0xff]  ;;  %v2494_v42 = vpack.c.bf16 %v96_v32, %v92_v31 }
  0x41   :  { %1619 = vmatprep.subr.bf16.mxu0 %v2474_v17  ;;  %v90_v41 = vld [vmem:[#allocation7 + $0xb0] sm:$0xff]  ;;  %v100_v43 = vld [vmem:[#allocation7 + $0x100] sm:$0xff]  ;;  %v2496_v45 = vpack.c.bf16 %v91_v39, %v87_v38  ;;  %v2499_v46 = vpack.c.bf16 %v105_v36, %v101_v35  ;;  %v109_v47 = vld [vmem:[#allocation7 + $0x148] sm:$0xff] }
  0x42   :  { %v104_v44 = vld [vmem:[#allocation7 + $0x120] sm:$0xff]  ;;  %1649 = vmatpush1.bf16.msra.mxu1 %v2490_v37  ;;  %v2502_v48 = vpack.c.bf16 %v90_v41, %v86_v40  ;;  %v95_v49 = vld [vmem:[#allocation7 + $0xd8] sm:$0xff]  ;;  %v113_v51 = vld [vmem:[#allocation7 + $0x168] sm:$0xff] }
  0x43   :  { %v99_v50 = vld [vmem:[#allocation7 + $0xf8] sm:$0xff]  ;;  %1651 = vmatprep.subr.bf16.mxu1 %v2496_v45  ;;  %v94_v53 = vld [vmem:[#allocation7 + $0xd0] sm:$0xff]  ;;  %v2508_v55 = vpack.c.bf16 %v104_v44, %v100_v43  ;;  %v2511_v58 = vpack.c.bf16 %v113_v51, %v109_v47  ;;  %v108_v59 = vld [vmem:[#allocation7 + $0x140] sm:$0xff] }
  0x44   :  { %1621 = vmatpush1.bf16.msra.mxu0 %v2481_v26  ;;  %v2505_v52 = vpack.c.bf16 %v99_v50, %v95_v49  ;;  %v98_v54 = vld [vmem:[#allocation7 + $0xf0] sm:$0xff]  ;;  %v103_v56 = vld [vmem:[#allocation7 + $0x118] sm:$0xff]  ;;  %v112_v60 = vld [vmem:[#allocation7 + $0x160] sm:$0xff] }
  0x45   :  { %1623 = vmatprep.subr.bf16.mxu0 %v2485_v30  ;;  %v107_v57 = vld [vmem:[#allocation7 + $0x138] sm:$0xff]  ;;  %v117_v61 = vld [vmem:[#allocation7 + $0x188] sm:$0xff]  ;;  %v2514_v62 = vpack.c.bf16 %v98_v54, %v94_v53  ;;  %v102_v2 = vld [vmem:[#allocation7 + $0x110] sm:$0xff]  ;;  %v2520_v7 = vpack.c.bf16 %v112_v60, %v108_v59 }
  0x46   :  { %1653 = vmatpush1.bf16.msra.mxu1 %v2502_v48  ;;  %v121_v63 = vld [vmem:[#allocation7 + $0x1a8] sm:$0xff]  ;;  %v2517_v1 = vpack.c.bf16 %v107_v57, %v103_v56  ;;  %v106_v3 = vld [vmem:[#allocation7 + $0x130] sm:$0xff]  ;;  %v111_v5 = vld [vmem:[#allocation7 + $0x158] sm:$0xff] }
  0x47   :  { %1655 = vmatprep.subr.bf16.mxu1 %v2505_v52  ;;  %v115_v6 = vld [vmem:[#allocation7 + $0x178] sm:$0xff]  ;;  %v2523_v10 = vpack.c.bf16 %v121_v63, %v117_v61  ;;  %v116_v11 = vld [vmem:[#allocation7 + $0x180] sm:$0xff]  ;;  %v125_v13 = vld [vmem:[#allocation7 + $0x1c8] sm:$0xff]  ;;  %v2526_v15 = vpack.c.bf16 %v106_v3, %v102_v2 }
  0x48   :  { %1625 = vmatpush1.bf16.msra.mxu0 %v2494_v42  ;;  %v120_v12 = vld [vmem:[#allocation7 + $0x1a0] sm:$0xff]  ;;  %v129_v16 = vld [vmem:[#allocation7 + $0x1e8] sm:$0xff]  ;;  %v2529_v18 = vpack.c.bf16 %v115_v6, %v111_v5  ;;  %v110_v19 = vld [vmem:[#allocation7 + $0x150] sm:$0xff] }
  0x49   :  { %1627 = vmatprep.subr.bf16.mxu0 %v2499_v46  ;;  %v114_v20 = vld [vmem:[#allocation7 + $0x170] sm:$0xff]  ;;  %v119_v21 = vld [vmem:[#allocation7 + $0x198] sm:$0xff]  ;;  %v2532_v24 = vpack.c.bf16 %v120_v12, %v116_v11  ;;  %v2535_v27 = vpack.c.bf16 %v129_v16, %v125_v13  ;;  %v124_v28 = vld [vmem:[#allocation7 + $0x1c0] sm:$0xff] }
  0x4a   :  { %1657 = vmatpush1.bf16.msra.mxu1 %v2514_v62  ;;  %v123_v23 = vld [vmem:[#allocation7 + $0x1b8] sm:$0xff]  ;;  %v128_v29 = vld [vmem:[#allocation7 + $0x1e0] sm:$0xff]  ;;  %v2538_v31 = vpack.c.bf16 %v114_v20, %v110_v19  ;;  %v118_v34 = vld [vmem:[#allocation7 + $0x190] sm:$0xff] }
  0x4b   :  { %1659 = vmatprep.subr.bf16.mxu1 %v2517_v1  ;;  %v2541_v32 = vpack.c.bf16 %v123_v23, %v119_v21  ;;  %v122_v35 = vld [vmem:[#allocation7 + $0x1b0] sm:$0xff]  ;;  %v127_v36 = vld [vmem:[#allocation7 + $0x1d8] sm:$0xff]  ;;  %v2544_v39 = vpack.c.bf16 %v128_v29, %v124_v28  ;;  %v64_v47 = vld [vmem:[#allocation9] sm:$0xff] }
  0x4c   :  { %1629 = vmatpush1.bf16.msra.mxu0 %v2508_v55  ;;  %v131_v38 = vld [vmem:[#allocation7 + $0x1f8] sm:$0xff]  ;;  %v2548_v40 = vpack.c.bf16 %v122_v35, %v118_v34  ;;  %v126_v43 = vld [vmem:[#allocation7 + $0x1d0] sm:$0xff]  ;;  %v134_v50 = vld [vmem:[#allocation4] sm:$0xff] }
  0x4d   :  { %1631 = vmatprep.subr.bf16.mxu0 %v2511_v58  ;;  %v2551_v41 = vpack.c.bf16 %v131_v38, %v127_v36  ;;  %v130_v44 = vld [vmem:[#allocation7 + $0x1f0] sm:$0xff]  ;;  %v135_v51 = vld [vmem:[#allocation4 + $0x8] sm:$0xff]  ;;  %v137_v61 = vld [vmem:[#allocation4 + $0x18] sm:$0xff] }
  0x4e   :  { %1661 = vmatpush1.bf16.msra.mxu1 %v2526_v15  ;;  %v2555_v49 = vpack.c.bf16 %v130_v44, %v126_v43  ;;  %v136_v5 = vld [vmem:[#allocation4 + $0x10] sm:$0xff]  ;;  %v66_v23 = vld [vmem:[%s2851_s3] sm:$0xff]  ;;  %s2384_s3 = smov [#allocation11]  }
  0x4f   :  { %1663 = vmatprep.subr.bf16.mxu1 %v2529_v18  ;;  %s1572_s30 = sshll.u32 %s2384_s3, 4  ;;  %s1573_s30 = int_to_ptr.vmem [resolvable:$true] %s1572_s30 }
  0x50   :  { %1633 = vmatpush1.bf16.msra.mxu0 %v2520_v7  ;;  %s2326_s6 = scalar_lea.vmem %s1573_s30, 128  ;;  %p2331_p11 = scmp.lt.s32.totalorder %s1573_s30, %s1573_s30 }
  0x51   :  { %1635 = vmatprep.subr.bf16.mxu0 %v2523_v10  ;;  %p2327_p10 = scmp.ne.s32.totalorder %s1573_s30, %s2326_s6  ;;  %p2332_p12 = scmp.lt.s32.totalorder %s2326_s6, %s2326_s6 }
  0x52   :  { %1665 = vmatpush1.bf16.msra.mxu1 %v2538_v31 }
  0x53   :  { %1667 = vmatprep.subr.bf16.mxu1 %v2541_v32  ;;  %p2333_p13 = por %p2332_p12, %p2331_p11 }
  0x54   :  { %1637 = vmatpush1.bf16.msra.mxu0 %v2532_v24 }
  0x55   :  { %1639 = vmatprep.subr.bf16.mxu0 %v2535_v27  ;;  %p2334_p0 = pnand %p2333_p13, %p2327_p10 }
  0x56   :  { %1669 = vmatpush1.bf16.msra.mxu1 %v2548_v40 }
  0x57   :  { %1671 = vmatprep.subr.bf16.mxu1 %v2551_v41 }
  0x58   :  { %1641 = vmatpush1.bf16.msra.mxu0 %v2544_v39 }
  0x59   :  { %1675 = vmatprep.subr.bf16.mxu0 %v2463_v4 }
  0x5a   :  { %1673 = vmatpush1.bf16.msra.mxu1 %v2555_v49 }
  0x5b   :  { %203 = vmatmul.mubr.f32.vlgmr.msra.gmra.mrb[0].mxu0 %v64_v47  ;;  %1707 = vmatprep.subr.bf16.mxu1 %v2476_v22 }
  0x5c   :  { %1677 = vmatpush1.bf16.msra.mxu0 %v2465_v8  ;;  %378 = vmatprep.mubr.f32.mxu0 %v2383_v0 }
  0x5d   :  { %1679 = vmatprep.subr.bf16.mxu0 %v2467_v9  ;;  %274 = vmatmul.mubr.f32.vlgmr.msra.gmra.mrb[0].mxu1 %v64_v47 }
  0x5e   :  { %1709 = vmatpush1.bf16.msra.mxu1 %v2478_v25  ;;  %449 = vmatprep.mubr.f32.mxu1 %v2383_v0 }
  0x5f   :  { %1711 = vmatprep.subr.bf16.mxu1 %v2488_v33 }
  0x60   :  { %1681 = vmatpush1.bf16.msra.mxu0 %v2471_v14 }
  0x61   :  { %1683 = vmatprep.subr.bf16.mxu0 %v2474_v17 }
  0x62   :  { %1713 = vmatpush1.bf16.msra.mxu1 %v2490_v37 }
  0x63   :  { %1715 = vmatprep.subr.bf16.mxu1 %v2496_v45 }
  0x64   :  { %1685 = vmatpush1.bf16.msra.mxu0 %v2481_v26 }
  0x65   :  { %1687 = vmatprep.subr.bf16.mxu0 %v2485_v30 }
  0x66   :  { %1717 = vmatpush1.bf16.msra.mxu1 %v2502_v48 }
  0x67   :  { %1719 = vmatprep.subr.bf16.mxu1 %v2505_v52 }
  0x68   :  { %1689 = vmatpush1.bf16.msra.mxu0 %v2494_v42 }
  0x69   :  { %1691 = vmatprep.subr.bf16.mxu0 %v2499_v46 }
  0x6a   :  { %1721 = vmatpush1.bf16.msra.mxu1 %v2514_v62 }
  0x6b   :  { %1723 = vmatprep.subr.bf16.mxu1 %v2517_v1 }
  0x6c   :  { %1693 = vmatpush1.bf16.msra.mxu0 %v2508_v55 }
  0x6d   :  { %1695 = vmatprep.subr.bf16.mxu0 %v2511_v58 }
  0x6e   :  { %1725 = vmatpush1.bf16.msra.mxu1 %v2526_v15 }
  0x6f   :  { %1727 = vmatprep.subr.bf16.mxu1 %v2529_v18 }
  0x70   :  { %1697 = vmatpush1.bf16.msra.mxu0 %v2520_v7 }
  0x71   :  { %1699 = vmatprep.subr.bf16.mxu0 %v2523_v10 }
  0x72   :  { %1729 = vmatpush1.bf16.msra.mxu1 %v2538_v31 }
  0x73   :  { %1731 = vmatprep.subr.bf16.mxu1 %v2541_v32 }
  0x74   :  { %1701 = vmatpush1.bf16.msra.mxu0 %v2532_v24 }
  0x75   :  { %1703 = vmatprep.subr.bf16.mxu0 %v2535_v27 }
  0x76   :  { %1733 = vmatpush1.bf16.msra.mxu1 %v2548_v40 }
  0x77   :  { %1735 = vmatprep.subr.bf16.mxu1 %v2551_v41 }
  0x78   :  { %1705 = vmatpush1.bf16.msra.mxu0 %v2544_v39 }
  0x79   :  { %1739 = vmatprep.subr.bf16.mxu0 %v2463_v4 }
  0x7a   :  { %1737 = vmatpush1.bf16.msra.mxu1 %v2555_v49 }
  0x7b   :  { %1771 = vmatprep.subr.bf16.mxu1 %v2476_v22 }
 0x12e   :  { %v204_v53 = vpop.f32.mrb[0].mxu0 }
 0x12f   :  { %v280_v54 = vadd.f32 %v204_v53, %v134_v50  ;;  %v206_v56 = vpop.f32.mrb[1].mxu0  ;;  %v310_v50 = vld [vmem:[#allocation4 + $0x20] sm:$0xff] }
 0x130   :  { %v281_v57 = vadd.f32 %v206_v56, %v135_v51  ;;  %v275_v63 = vpop.f32.mrb[0].mxu1  ;;  %v311_v51 = vld [vmem:[#allocation4 + $0x28] sm:$0xff] }
 0x131   :  { %v1586_v59 = vmul.f32 -1.442695, %v280_v54  ;;  %v277_v2 = vpop.f32.mrb[1].mxu1  ;;  %v282_v11 = vadd.f32 %v275_v63, %v136_v5  ;;  %v312_v5 = vld [vmem:[#allocation4 + $0x30] sm:$0xff] }
 0x132   :  { %v1587_v60 = vmul.f32 -1.442695, %v281_v57  ;;  %v283_v3 = vadd.f32 %v277_v2, %v137_v61  ;;  %v313_v2 = vld [vmem:[#allocation4 + $0x38] sm:$0xff] }
 0x133   :  { %2132 = vpow2.f32 %v1586_v59 }
 0x134   :  { %2134 = vpow2.f32 %v1587_v60  ;;  %v1588_v6 = vmul.f32 -1.442695, %v283_v3 }
 0x136   :  { %2136 = vpow2.f32 %v1588_v6 }
 0x137   :  { %2138 = vtanh.f32 %v282_v11 }
 0x13d   :  { %v2133_v12 = vpop.eup %2132 }
 0x13e   :  { %v2135_v13 = vpop.eup %2134  ;;  %v287_v16 = vadd.f32 1.0, %v2133_v12 }
 0x13f   :  { %v293_v19 = vadd.f32 1.0, %v2135_v13 }
 0x140   :  { %2140 = vrcp.f32 %v287_v16  ;;  %v2137_v20 = vpop.eup %2136 }
 0x141   :  { %2142 = vrcp.f32 %v293_v19  ;;  %v2139_v21 = vpop.eup %2138  ;;  %v300_v29 = vadd.f32 1.0, %v2137_v20 }
 0x143   :  { %2144 = vrcp.f32 %v300_v29 }
 0x14a   :  { %v2141_v28 = vpop.eup %2140 }
 0x14b   :  { %v2143_v34 = vpop.eup %2142  ;;  %v304_v35 = vmul.f32 %v2141_v28, %v2139_v21 }
 0x14c   :  { %v303_v36 = vmul.f32 %v2143_v34, %v66_v23 }
 0x14d   :  { %v2145_v43 = vpop.eup %2144 }
 0x14e   :  { %v2598_v38 = vadd.f32 %v304_v35, %v303_v36 }
 0x150   :  { %2146 = vtanh.f32 %v2598_v38 }
 0x15a   :  { %v2147_v44 = vpop.eup %2146 }
 0x15b   :  { %v307_v47 = vmul.f32 %v2147_v44, %v2145_v43 }
 0x15d   :  { %308 = vst [vmem:[#allocation10] sm:$0xff] %v307_v47  ;;  %379 = vmatmul.mubr.f32.vlgmr.msra.gmra.mrb[2].mxu0 %v307_v47  ;;  %450 = vmatmul.mubr.f32.vlgmr.msra.gmra.mrb[2].mxu1 %v307_v47 }
 0x15e   :  { %1741 = vmatpush1.bf16.msra.mxu0 %v2465_v8  ;;  %1773 = vmatpush1.bf16.msra.mxu1 %v2478_v25 }
 0x15f   :  { %1743 = vmatprep.subr.bf16.mxu0 %v2467_v9  ;;  %1775 = vmatprep.subr.bf16.mxu1 %v2488_v33 }
 0x160   :  { %555 = vmatprep.mubr.f32.mxu0 %v2383_v0  ;;  %626 = vmatprep.mubr.f32.mxu1 %v2383_v0 }
 0x162   :  { %1745 = vmatpush1.bf16.msra.mxu0 %v2471_v14  ;;  %1777 = vmatpush1.bf16.msra.mxu1 %v2490_v37 }
 0x163   :  { %1747 = vmatprep.subr.bf16.mxu0 %v2474_v17  ;;  %1779 = vmatprep.subr.bf16.mxu1 %v2496_v45 }
 0x166   :  { %1749 = vmatpush1.bf16.msra.mxu0 %v2481_v26  ;;  %1781 = vmatpush1.bf16.msra.mxu1 %v2502_v48 }
 0x167   :  { %1751 = vmatprep.subr.bf16.mxu0 %v2485_v30  ;;  %1783 = vmatprep.subr.bf16.mxu1 %v2505_v52 }
 0x16a   :  { %1753 = vmatpush1.bf16.msra.mxu0 %v2494_v42  ;;  %1785 = vmatpush1.bf16.msra.mxu1 %v2514_v62 }
 0x16b   :  { %1755 = vmatprep.subr.bf16.mxu0 %v2499_v46  ;;  %1787 = vmatprep.subr.bf16.mxu1 %v2517_v1 }
 0x16e   :  { %1757 = vmatpush1.bf16.msra.mxu0 %v2508_v55  ;;  %1789 = vmatpush1.bf16.msra.mxu1 %v2526_v15 }
 0x16f   :  { %1759 = vmatprep.subr.bf16.mxu0 %v2511_v58  ;;  %1791 = vmatprep.subr.bf16.mxu1 %v2529_v18 }
 0x172   :  { %1761 = vmatpush1.bf16.msra.mxu0 %v2520_v7  ;;  %1793 = vmatpush1.bf16.msra.mxu1 %v2538_v31 }
 0x173   :  { %1763 = vmatprep.subr.bf16.mxu0 %v2523_v10  ;;  %1795 = vmatprep.subr.bf16.mxu1 %v2541_v32 }
 0x176   :  { %1765 = vmatpush1.bf16.msra.mxu0 %v2532_v24  ;;  %1797 = vmatpush1.bf16.msra.mxu1 %v2548_v40 }
 0x177   :  { %1767 = vmatprep.subr.bf16.mxu0 %v2535_v27  ;;  %1799 = vmatprep.subr.bf16.mxu1 %v2551_v41 }
 0x17a   :  { %1769 = vmatpush1.bf16.msra.mxu0 %v2544_v39  ;;  %1801 = vmatpush1.bf16.msra.mxu1 %v2555_v49 }
 0x17b   :  { %1803 = vmatprep.subr.bf16.mxu0 %v2463_v4  ;;  %1835 = vmatprep.subr.bf16.mxu1 %v2476_v22 }
 0x230   :  { %v380_v53 = vpop.f32.mrb[2].mxu0  ;;  %v451_v54 = vpop.f32.mrb[2].mxu1 }
 0x231   :  { %v456_v56 = vadd.f32 %v380_v53, %v310_v50  ;;  %v382_v57 = vpop.f32.mrb[3].mxu0  ;;  %v453_v59 = vpop.f32.mrb[3].mxu1  ;;  %v458_v11 = vadd.f32 %v451_v54, %v312_v5  ;;  %v488_v50 = vld [vmem:[#allocation4 + $0x48] sm:$0xff] }
 0x232   :  { %v457_v60 = vadd.f32 %v382_v57, %v311_v51  ;;  %v459_v3 = vadd.f32 %v453_v59, %v313_v2 }
 0x233   :  { %v1589_v61 = vmul.f32 -1.442695, %v456_v56 }
 0x234   :  { %v1590_v63 = vmul.f32 -1.442695, %v457_v60  ;;  %v1591_v6 = vmul.f32 -1.442695, %v459_v3  ;;  %v489_v3 = vld [vmem:[#allocation4 + $0x50] sm:$0xff] }
 0x235   :  { %2148 = vpow2.f32 %v1589_v61 }
 0x236   :  { %2150 = vpow2.f32 %v1590_v63  ;;  %v490_v63 = vld [vmem:[#allocation4 + $0x58] sm:$0xff] }
 0x237   :  { %2152 = vpow2.f32 %v1591_v6 }
 0x238   :  { %2154 = vtanh.f32 %v458_v11 }
 0x23f   :  { %v2149_v12 = vpop.eup %2148 }
 0x240   :  { %v2151_v13 = vpop.eup %2150  ;;  %v463_v16 = vadd.f32 1.0, %v2149_v12 }
 0x241   :  { %v469_v19 = vadd.f32 1.0, %v2151_v13  ;;  %v2153_v20 = vpop.eup %2152 }
 0x242   :  { %2156 = vrcp.f32 %v463_v16  ;;  %v2155_v21 = vpop.eup %2154  ;;  %v476_v34 = vadd.f32 1.0, %v2153_v20 }
 0x243   :  { %2158 = vrcp.f32 %v469_v19 }
 0x244   :  { %2160 = vrcp.f32 %v476_v34 }
 0x24c   :  { %v2157_v23 = vpop.eup %2156 }
 0x24d   :  { %v2159_v28 = vpop.eup %2158  ;;  %v480_v29 = vmul.f32 %v2157_v23, %v2155_v21 }
 0x24e   :  { %v479_v35 = vmul.f32 %v2159_v28, %v2598_v38  ;;  %v2161_v43 = vpop.eup %2160  ;;  %v487_v38 = vld [vmem:[#allocation4 + $0x40] sm:$0xff] }
 0x250   :  { %v2636_v36 = vadd.f32 %v480_v29, %v479_v35 }
 0x252   :  { %2162 = vtanh.f32 %v2636_v36 }
 0x25c   :  { %v2163_v44 = vpop.eup %2162 }
 0x25d   :  { %v483_v47 = vmul.f32 %v2163_v44, %v2161_v43 }
 0x25f   :  { %485 = vst [vmem:[#allocation10 + $0x8] sm:$0xff] %v483_v47  ;;  %556 = vmatmul.mubr.f32.vlgmr.msra.gmra.mrb[4].mxu0 %v483_v47  ;;  %627 = vmatmul.mubr.f32.vlgmr.msra.gmra.mrb[4].mxu1 %v483_v47 }
 0x260   :  { %1805 = vmatpush1.bf16.msra.mxu0 %v2465_v8  ;;  %1837 = vmatpush1.bf16.msra.mxu1 %v2478_v25 }
 0x261   :  { %1807 = vmatprep.subr.bf16.mxu0 %v2467_v9  ;;  %1839 = vmatprep.subr.bf16.mxu1 %v2488_v33 }
 0x262   :  { %732 = vmatprep.mubr.f32.mxu0 %v2383_v0  ;;  %803 = vmatprep.mubr.f32.mxu1 %v2383_v0 }
 0x264   :  { %1809 = vmatpush1.bf16.msra.mxu0 %v2471_v14  ;;  %1841 = vmatpush1.bf16.msra.mxu1 %v2490_v37 }
 0x265   :  { %1811 = vmatprep.subr.bf16.mxu0 %v2474_v17  ;;  %1843 = vmatprep.subr.bf16.mxu1 %v2496_v45 }
 0x268   :  { %1813 = vmatpush1.bf16.msra.mxu0 %v2481_v26  ;;  %1845 = vmatpush1.bf16.msra.mxu1 %v2502_v48 }
 0x269   :  { %1815 = vmatprep.subr.bf16.mxu0 %v2485_v30  ;;  %1847 = vmatprep.subr.bf16.mxu1 %v2505_v52 }
 0x26c   :  { %1817 = vmatpush1.bf16.msra.mxu0 %v2494_v42  ;;  %1849 = vmatpush1.bf16.msra.mxu1 %v2514_v62 }
 0x26d   :  { %1819 = vmatprep.subr.bf16.mxu0 %v2499_v46  ;;  %1851 = vmatprep.subr.bf16.mxu1 %v2517_v1 }
 0x270   :  { %1821 = vmatpush1.bf16.msra.mxu0 %v2508_v55  ;;  %1853 = vmatpush1.bf16.msra.mxu1 %v2526_v15 }
 0x271   :  { %1823 = vmatprep.subr.bf16.mxu0 %v2511_v58  ;;  %1855 = vmatprep.subr.bf16.mxu1 %v2529_v18 }
 0x274   :  { %1825 = vmatpush1.bf16.msra.mxu0 %v2520_v7  ;;  %1857 = vmatpush1.bf16.msra.mxu1 %v2538_v31 }
 0x275   :  { %1827 = vmatprep.subr.bf16.mxu0 %v2523_v10  ;;  %1859 = vmatprep.subr.bf16.mxu1 %v2541_v32 }
 0x278   :  { %1829 = vmatpush1.bf16.msra.mxu0 %v2532_v24  ;;  %1861 = vmatpush1.bf16.msra.mxu1 %v2548_v40 }
 0x279   :  { %1831 = vmatprep.subr.bf16.mxu0 %v2535_v27  ;;  %1863 = vmatprep.subr.bf16.mxu1 %v2551_v41 }
 0x27c   :  { %1833 = vmatpush1.bf16.msra.mxu0 %v2544_v39  ;;  %1865 = vmatpush1.bf16.msra.mxu1 %v2555_v49 }
 0x27d   :  { %1867 = vmatprep.subr.bf16.mxu0 %v2463_v4  ;;  %1899 = vmatprep.subr.bf16.mxu1 %v2476_v22 }
 0x332   :  { %v557_v51 = vpop.f32.mrb[4].mxu0  ;;  %v628_v53 = vpop.f32.mrb[4].mxu1 }
 0x333   :  { %v633_v54 = vadd.f32 %v557_v51, %v487_v38  ;;  %v559_v56 = vpop.f32.mrb[5].mxu0  ;;  %v630_v57 = vpop.f32.mrb[5].mxu1  ;;  %v635_v6 = vadd.f32 %v628_v53, %v489_v3  ;;  %v665_v38 = vld [vmem:[#allocation4 + $0x68] sm:$0xff] }
 0x334   :  { %v634_v59 = vadd.f32 %v559_v56, %v488_v50  ;;  %v636_v2 = vadd.f32 %v630_v57, %v490_v63 }
 0x335   :  { %v1592_v60 = vmul.f32 -1.442695, %v633_v54 }
 0x336   :  { %v1593_v61 = vmul.f32 -1.442695, %v634_v59  ;;  %v1594_v5 = vmul.f32 -1.442695, %v636_v2  ;;  %v666_v2 = vld [vmem:[#allocation4 + $0x70] sm:$0xff] }
 0x337   :  { %2164 = vpow2.f32 %v1592_v60 }
 0x338   :  { %2166 = vpow2.f32 %v1593_v61  ;;  %v667_v61 = vld [vmem:[#allocation4 + $0x78] sm:$0xff] }
 0x339   :  { %2168 = vpow2.f32 %v1594_v5 }
 0x33a   :  { %2170 = vtanh.f32 %v635_v6 }
 0x341   :  { %v2165_v11 = vpop.eup %2164 }
 0x342   :  { %v2167_v12 = vpop.eup %2166  ;;  %v640_v13 = vadd.f32 1.0, %v2165_v11 }
 0x343   :  { %v646_v16 = vadd.f32 1.0, %v2167_v12  ;;  %v2169_v19 = vpop.eup %2168 }
 0x344   :  { %2172 = vrcp.f32 %v640_v13  ;;  %v2171_v20 = vpop.eup %2170  ;;  %v653_v29 = vadd.f32 1.0, %v2169_v19 }
 0x345   :  { %2174 = vrcp.f32 %v646_v16 }
 0x346   :  { %2176 = vrcp.f32 %v653_v29 }
 0x34e   :  { %v2173_v21 = vpop.eup %2172 }
 0x34f   :  { %v2175_v23 = vpop.eup %2174  ;;  %v657_v28 = vmul.f32 %v2173_v21, %v2171_v20 }
 0x350   :  { %v656_v34 = vmul.f32 %v2175_v23, %v2636_v36  ;;  %v2177_v43 = vpop.eup %2176  ;;  %v664_v36 = vld [vmem:[#allocation4 + $0x60] sm:$0xff] }
 0x352   :  { %v2674_v35 = vadd.f32 %v657_v28, %v656_v34 }
 0x354   :  { %2178 = vtanh.f32 %v2674_v35 }
 0x35e   :  { %v2179_v44 = vpop.eup %2178 }
 0x35f   :  { %v660_v47 = vmul.f32 %v2179_v44, %v2177_v43 }
 0x361   :  { %662 = vst [vmem:[#allocation10 + $0x10] sm:$0xff] %v660_v47  ;;  %733 = vmatmul.mubr.f32.vlgmr.msra.gmra.mrb[6].mxu0 %v660_v47  ;;  %804 = vmatmul.mubr.f32.vlgmr.msra.gmra.mrb[6].mxu1 %v660_v47 }
 0x362   :  { %1869 = vmatpush1.bf16.msra.mxu0 %v2465_v8  ;;  %1901 = vmatpush1.bf16.msra.mxu1 %v2478_v25 }
 0x363   :  { %1871 = vmatprep.subr.bf16.mxu0 %v2467_v9  ;;  %1903 = vmatprep.subr.bf16.mxu1 %v2488_v33 }
 0x364   :  { %909 = vmatprep.mubr.f32.mxu0 %v2383_v0  ;;  %980 = vmatprep.mubr.f32.mxu1 %v2383_v0 }
 0x366   :  { %1873 = vmatpush1.bf16.msra.mxu0 %v2471_v14  ;;  %1905 = vmatpush1.bf16.msra.mxu1 %v2490_v37 }
 0x367   :  { %1875 = vmatprep.subr.bf16.mxu0 %v2474_v17  ;;  %1907 = vmatprep.subr.bf16.mxu1 %v2496_v45 }
 0x36a   :  { %1877 = vmatpush1.bf16.msra.mxu0 %v2481_v26  ;;  %1909 = vmatpush1.bf16.msra.mxu1 %v2502_v48 }
 0x36b   :  { %1879 = vmatprep.subr.bf16.mxu0 %v2485_v30  ;;  %1911 = vmatprep.subr.bf16.mxu1 %v2505_v52 }
 0x36e   :  { %1881 = vmatpush1.bf16.msra.mxu0 %v2494_v42  ;;  %1913 = vmatpush1.bf16.msra.mxu1 %v2514_v62 }
 0x36f   :  { %1883 = vmatprep.subr.bf16.mxu0 %v2499_v46  ;;  %1915 = vmatprep.subr.bf16.mxu1 %v2517_v1 }
 0x372   :  { %1885 = vmatpush1.bf16.msra.mxu0 %v2508_v55  ;;  %1917 = vmatpush1.bf16.msra.mxu1 %v2526_v15 }
 0x373   :  { %1887 = vmatprep.subr.bf16.mxu0 %v2511_v58  ;;  %1919 = vmatprep.subr.bf16.mxu1 %v2529_v18 }
 0x376   :  { %1889 = vmatpush1.bf16.msra.mxu0 %v2520_v7  ;;  %1921 = vmatpush1.bf16.msra.mxu1 %v2538_v31 }
 0x377   :  { %1891 = vmatprep.subr.bf16.mxu0 %v2523_v10  ;;  %1923 = vmatprep.subr.bf16.mxu1 %v2541_v32 }
 0x37a   :  { %1893 = vmatpush1.bf16.msra.mxu0 %v2532_v24  ;;  %1925 = vmatpush1.bf16.msra.mxu1 %v2548_v40 }
 0x37b   :  { %1895 = vmatprep.subr.bf16.mxu0 %v2535_v27  ;;  %1927 = vmatprep.subr.bf16.mxu1 %v2551_v41 }
 0x37e   :  { %1897 = vmatpush1.bf16.msra.mxu0 %v2544_v39  ;;  %1929 = vmatpush1.bf16.msra.mxu1 %v2555_v49 }
 0x37f   :  { %1931 = vmatprep.subr.bf16.mxu0 %v2463_v4  ;;  %1963 = vmatprep.subr.bf16.mxu1 %v2476_v22 }
 0x434   :  { %v734_v50 = vpop.f32.mrb[6].mxu0  ;;  %v805_v51 = vpop.f32.mrb[6].mxu1 }
 0x435   :  { %v810_v53 = vadd.f32 %v734_v50, %v664_v36  ;;  %v736_v54 = vpop.f32.mrb[7].mxu0  ;;  %v807_v56 = vpop.f32.mrb[7].mxu1  ;;  %v812_v5 = vadd.f32 %v805_v51, %v666_v2  ;;  %v842_v36 = vld [vmem:[#allocation4 + $0x88] sm:$0xff] }
 0x436   :  { %v811_v57 = vadd.f32 %v736_v54, %v665_v38  ;;  %v813_v63 = vadd.f32 %v807_v56, %v667_v61 }
 0x437   :  { %v1595_v59 = vmul.f32 -1.442695, %v810_v53 }
 0x438   :  { %v1596_v60 = vmul.f32 -1.442695, %v811_v57  ;;  %v1597_v3 = vmul.f32 -1.442695, %v813_v63  ;;  %v843_v63 = vld [vmem:[#allocation4 + $0x90] sm:$0xff] }
 0x439   :  { %2180 = vpow2.f32 %v1595_v59 }
 0x43a   :  { %2182 = vpow2.f32 %v1596_v60  ;;  %v844_v60 = vld [vmem:[#allocation4 + $0x98] sm:$0xff] }
 0x43b   :  { %2184 = vpow2.f32 %v1597_v3 }
 0x43c   :  { %2186 = vtanh.f32 %v812_v5 }
 0x443   :  { %v2181_v6 = vpop.eup %2180 }
 0x444   :  { %v2183_v11 = vpop.eup %2182  ;;  %v817_v12 = vadd.f32 1.0, %v2181_v6 }
 0x445   :  { %v823_v13 = vadd.f32 1.0, %v2183_v11  ;;  %v2185_v16 = vpop.eup %2184 }
 0x446   :  { %2188 = vrcp.f32 %v817_v12  ;;  %v2187_v19 = vpop.eup %2186  ;;  %v830_v28 = vadd.f32 1.0, %v2185_v16 }
 0x447   :  { %2190 = vrcp.f32 %v823_v13 }
 0x448   :  { %2192 = vrcp.f32 %v830_v28 }
 0x450   :  { %v2189_v20 = vpop.eup %2188 }
 0x451   :  { %v2191_v21 = vpop.eup %2190  ;;  %v834_v23 = vmul.f32 %v2189_v20, %v2187_v19 }
 0x452   :  { %v833_v29 = vmul.f32 %v2191_v21, %v2674_v35  ;;  %v2193_v43 = vpop.eup %2192  ;;  %v841_v35 = vld [vmem:[#allocation4 + $0x80] sm:$0xff] }
 0x454   :  { %v2712_v34 = vadd.f32 %v834_v23, %v833_v29 }
 0x456   :  { %2194 = vtanh.f32 %v2712_v34 }
 0x460   :  { %v2195_v44 = vpop.eup %2194 }
 0x461   :  { %v837_v47 = vmul.f32 %v2195_v44, %v2193_v43 }
 0x463   :  { %839 = vst [vmem:[#allocation10 + $0x18] sm:$0xff] %v837_v47  ;;  %910 = vmatmul.mubr.f32.vlgmr.msra.gmra.mrb[8].mxu0 %v837_v47  ;;  %981 = vmatmul.mubr.f32.vlgmr.msra.gmra.mrb[8].mxu1 %v837_v47 }
 0x464   :  { %1933 = vmatpush1.bf16.msra.mxu0 %v2465_v8  ;;  %1965 = vmatpush1.bf16.msra.mxu1 %v2478_v25 }
 0x465   :  { %1935 = vmatprep.subr.bf16.mxu0 %v2467_v9  ;;  %1967 = vmatprep.subr.bf16.mxu1 %v2488_v33 }
 0x466   :  { %1086 = vmatprep.mubr.f32.mxu0 %v2383_v0  ;;  %1157 = vmatprep.mubr.f32.mxu1 %v2383_v0 }
 0x468   :  { %1937 = vmatpush1.bf16.msra.mxu0 %v2471_v14  ;;  %1969 = vmatpush1.bf16.msra.mxu1 %v2490_v37 }
 0x469   :  { %1939 = vmatprep.subr.bf16.mxu0 %v2474_v17  ;;  %1971 = vmatprep.subr.bf16.mxu1 %v2496_v45 }
 0x46c   :  { %1941 = vmatpush1.bf16.msra.mxu0 %v2481_v26  ;;  %1973 = vmatpush1.bf16.msra.mxu1 %v2502_v48 }
 0x46d   :  { %1943 = vmatprep.subr.bf16.mxu0 %v2485_v30  ;;  %1975 = vmatprep.subr.bf16.mxu1 %v2505_v52 }
 0x470   :  { %1945 = vmatpush1.bf16.msra.mxu0 %v2494_v42  ;;  %1977 = vmatpush1.bf16.msra.mxu1 %v2514_v62 }
 0x471   :  { %1947 = vmatprep.subr.bf16.mxu0 %v2499_v46  ;;  %1979 = vmatprep.subr.bf16.mxu1 %v2517_v1 }
 0x474   :  { %1949 = vmatpush1.bf16.msra.mxu0 %v2508_v55  ;;  %1981 = vmatpush1.bf16.msra.mxu1 %v2526_v15 }
 0x475   :  { %1951 = vmatprep.subr.bf16.mxu0 %v2511_v58  ;;  %1983 = vmatprep.subr.bf16.mxu1 %v2529_v18 }
 0x478   :  { %1953 = vmatpush1.bf16.msra.mxu0 %v2520_v7  ;;  %1985 = vmatpush1.bf16.msra.mxu1 %v2538_v31 }
 0x479   :  { %1955 = vmatprep.subr.bf16.mxu0 %v2523_v10  ;;  %1987 = vmatprep.subr.bf16.mxu1 %v2541_v32 }
 0x47c   :  { %1957 = vmatpush1.bf16.msra.mxu0 %v2532_v24  ;;  %1989 = vmatpush1.bf16.msra.mxu1 %v2548_v40 }
 0x47d   :  { %1959 = vmatprep.subr.bf16.mxu0 %v2535_v27  ;;  %1991 = vmatprep.subr.bf16.mxu1 %v2551_v41 }
 0x480   :  { %1961 = vmatpush1.bf16.msra.mxu0 %v2544_v39  ;;  %1993 = vmatpush1.bf16.msra.mxu1 %v2555_v49 }
 0x481   :  { %1995 = vmatprep.subr.bf16.mxu0 %v2463_v4  ;;  %2027 = vmatprep.subr.bf16.mxu1 %v2476_v22 }
 0x536   :  { %v911_v38 = vpop.f32.mrb[8].mxu0  ;;  %v982_v50 = vpop.f32.mrb[8].mxu1 }
 0x537   :  { %v987_v51 = vadd.f32 %v911_v38, %v841_v35  ;;  %v913_v53 = vpop.f32.mrb[9].mxu0  ;;  %v984_v54 = vpop.f32.mrb[9].mxu1  ;;  %v989_v3 = vadd.f32 %v982_v50, %v843_v63  ;;  %v1019_v35 = vld [vmem:[#allocation4 + $0xa8] sm:$0xff] }
 0x538   :  { %v988_v56 = vadd.f32 %v913_v53, %v842_v36  ;;  %v990_v61 = vadd.f32 %v984_v54, %v844_v60 }
 0x539   :  { %v1598_v57 = vmul.f32 -1.442695, %v987_v51 }
 0x53a   :  { %v1599_v59 = vmul.f32 -1.442695, %v988_v56  ;;  %v1600_v2 = vmul.f32 -1.442695, %v990_v61  ;;  %v1020_v61 = vld [vmem:[#allocation4 + $0xb0] sm:$0xff] }
 0x53b   :  { %2196 = vpow2.f32 %v1598_v57 }
 0x53c   :  { %2198 = vpow2.f32 %v1599_v59  ;;  %v1021_v59 = vld [vmem:[#allocation4 + $0xb8] sm:$0xff] }
 0x53d   :  { %2200 = vpow2.f32 %v1600_v2 }
 0x53e   :  { %2202 = vtanh.f32 %v989_v3 }
 0x545   :  { %v2197_v5 = vpop.eup %2196 }
 0x546   :  { %v2199_v6 = vpop.eup %2198  ;;  %v994_v11 = vadd.f32 1.0, %v2197_v5 }
 0x547   :  { %v1000_v12 = vadd.f32 1.0, %v2199_v6  ;;  %v2201_v13 = vpop.eup %2200 }
 0x548   :  { %2204 = vrcp.f32 %v994_v11  ;;  %v2203_v16 = vpop.eup %2202  ;;  %v1007_v23 = vadd.f32 1.0, %v2201_v13 }
 0x549   :  { %2206 = vrcp.f32 %v1000_v12 }
 0x54a   :  { %2208 = vrcp.f32 %v1007_v23 }
 0x552   :  { %v2205_v19 = vpop.eup %2204 }
 0x553   :  { %v2207_v20 = vpop.eup %2206  ;;  %v1011_v21 = vmul.f32 %v2205_v19, %v2203_v16 }
 0x554   :  { %v1010_v28 = vmul.f32 %v2207_v20, %v2712_v34  ;;  %v2209_v43 = vpop.eup %2208  ;;  %v1018_v34 = vld [vmem:[#allocation4 + $0xa0] sm:$0xff] }
 0x556   :  { %v2750_v29 = vadd.f32 %v1011_v21, %v1010_v28 }
 0x558   :  { %2210 = vtanh.f32 %v2750_v29 }
 0x562   :  { %v2211_v44 = vpop.eup %2210 }
 0x563   :  { %v1014_v47 = vmul.f32 %v2211_v44, %v2209_v43 }
 0x565   :  { %1016 = vst [vmem:[#allocation10 + $0x20] sm:$0xff] %v1014_v47  ;;  %1087 = vmatmul.mubr.f32.vlgmr.msra.gmra.mrb[10].mxu0 %v1014_v47  ;;  %1158 = vmatmul.mubr.f32.vlgmr.msra.gmra.mrb[10].mxu1 %v1014_v47 }
 0x566   :  { %1997 = vmatpush1.bf16.msra.mxu0 %v2465_v8  ;;  %2029 = vmatpush1.bf16.msra.mxu1 %v2478_v25 }
 0x567   :  { %1999 = vmatprep.subr.bf16.mxu0 %v2467_v9  ;;  %2031 = vmatprep.subr.bf16.mxu1 %v2488_v33 }
 0x568   :  { %1263 = vmatprep.mubr.f32.mxu0 %v2383_v0  ;;  %1334 = vmatprep.mubr.f32.mxu1 %v2383_v0 }
 0x56a   :  { %2001 = vmatpush1.bf16.msra.mxu0 %v2471_v14  ;;  %2033 = vmatpush1.bf16.msra.mxu1 %v2490_v37 }
 0x56b   :  { %2003 = vmatprep.subr.bf16.mxu0 %v2474_v17  ;;  %2035 = vmatprep.subr.bf16.mxu1 %v2496_v45 }
 0x56e   :  { %2005 = vmatpush1.bf16.msra.mxu0 %v2481_v26  ;;  %2037 = vmatpush1.bf16.msra.mxu1 %v2502_v48 }
 0x56f   :  { %2007 = vmatprep.subr.bf16.mxu0 %v2485_v30  ;;  %2039 = vmatprep.subr.bf16.mxu1 %v2505_v52 }
 0x572   :  { %2009 = vmatpush1.bf16.msra.mxu0 %v2494_v42  ;;  %2041 = vmatpush1.bf16.msra.mxu1 %v2514_v62 }
 0x573   :  { %2011 = vmatprep.subr.bf16.mxu0 %v2499_v46  ;;  %2043 = vmatprep.subr.bf16.mxu1 %v2517_v1 }
 0x576   :  { %2013 = vmatpush1.bf16.msra.mxu0 %v2508_v55  ;;  %2045 = vmatpush1.bf16.msra.mxu1 %v2526_v15 }
 0x577   :  { %2015 = vmatprep.subr.bf16.mxu0 %v2511_v58  ;;  %2047 = vmatprep.subr.bf16.mxu1 %v2529_v18 }
 0x57a   :  { %2017 = vmatpush1.bf16.msra.mxu0 %v2520_v7  ;;  %2049 = vmatpush1.bf16.msra.mxu1 %v2538_v31 }
 0x57b   :  { %2019 = vmatprep.subr.bf16.mxu0 %v2523_v10  ;;  %2051 = vmatprep.subr.bf16.mxu1 %v2541_v32 }
 0x57e   :  { %2021 = vmatpush1.bf16.msra.mxu0 %v2532_v24  ;;  %2053 = vmatpush1.bf16.msra.mxu1 %v2548_v40 }
 0x57f   :  { %2023 = vmatprep.subr.bf16.mxu0 %v2535_v27  ;;  %2055 = vmatprep.subr.bf16.mxu1 %v2551_v41 }
 0x582   :  { %2025 = vmatpush1.bf16.msra.mxu0 %v2544_v39  ;;  %2057 = vmatpush1.bf16.msra.mxu1 %v2555_v49 }
 0x583   :  { %2059 = vmatprep.subr.bf16.mxu0 %v2463_v4  ;;  %2091 = vmatprep.subr.bf16.mxu1 %v2476_v22 }
 0x638   :  { %v1088_v36 = vpop.f32.mrb[10].mxu0  ;;  %v1159_v38 = vpop.f32.mrb[10].mxu1 }
 0x639   :  { %v1164_v50 = vadd.f32 %v1088_v36, %v1018_v34  ;;  %v1090_v51 = vpop.f32.mrb[11].mxu0  ;;  %v1161_v53 = vpop.f32.mrb[11].mxu1  ;;  %v1166_v2 = vadd.f32 %v1159_v38, %v1020_v61 }
 0x63a   :  { %v1165_v54 = vadd.f32 %v1090_v51, %v1019_v35  ;;  %v1167_v60 = vadd.f32 %v1161_v53, %v1021_v59  ;;  %v1375_v53 = vld [vmem:[#allocation4 + $0xf8] sm:$0xff] }
 0x63b   :  { %v1601_v56 = vmul.f32 -1.442695, %v1164_v50 }
 0x63c   :  { %v1602_v57 = vmul.f32 -1.442695, %v1165_v54  ;;  %v1603_v63 = vmul.f32 -1.442695, %v1167_v60 }
 0x63d   :  { %2212 = vpow2.f32 %v1601_v56  ;;  %v1374_v56 = vld [vmem:[#allocation4 + $0xf0] sm:$0xff] }
 0x63e   :  { %2214 = vpow2.f32 %v1602_v57 }
 0x63f   :  { %2216 = vpow2.f32 %v1603_v63 }
 0x640   :  { %2218 = vtanh.f32 %v1166_v2 }
 0x647   :  { %v2213_v4 = vpop.eup %2212 }
 0x648   :  { %v2215_v3 = vpop.eup %2214  ;;  %v1171_v22 = vadd.f32 1.0, %v2213_v4 }
 0x649   :  { %v1177_v5 = vadd.f32 1.0, %v2215_v3  ;;  %v2217_v6 = vpop.eup %2216 }
 0x64a   :  { %2220 = vrcp.f32 %v1171_v22  ;;  %v2219_v11 = vpop.eup %2218  ;;  %v1184_v19 = vadd.f32 1.0, %v2217_v6 }
 0x64b   :  { %2222 = vrcp.f32 %v1177_v5 }
 0x64c   :  { %2224 = vrcp.f32 %v1184_v19 }
 0x654   :  { %v2221_v12 = vpop.eup %2220 }
 0x655   :  { %v2223_v13 = vpop.eup %2222  ;;  %v1188_v16 = vmul.f32 %v2221_v12, %v2219_v11 }
 0x656   :  { %v1187_v20 = vmul.f32 %v2223_v13, %v2750_v29  ;;  %v2225_v23 = vpop.eup %2224  ;;  %v1373_v29 = vld [vmem:[#allocation4 + $0xe8] sm:$0xff] }
 0x658   :  { %v2788_v21 = vadd.f32 %v1188_v16, %v1187_v20 }
 0x65a   :  { %2226 = vtanh.f32 %v2788_v21 }
 0x664   :  { %v2227_v28 = vpop.eup %2226 }
 0x665   :  { %v1191_v43 = vmul.f32 %v2227_v28, %v2225_v23 }
 0x667   :  { %1193 = vst [vmem:[#allocation10 + $0x28] sm:$0xff] %v1191_v43  ;;  %1264 = vmatmul.mubr.f32.vlgmr.msra.gmra.mrb[12].mxu0 %v1191_v43  ;;  %1335 = vmatmul.mubr.f32.vlgmr.msra.gmra.mrb[12].mxu1 %v1191_v43 }
 0x668   :  { %2061 = vmatpush1.bf16.msra.mxu0 %v2465_v8  ;;  %2093 = vmatpush1.bf16.msra.mxu1 %v2478_v25  ;;  %v1196_v8 = vld [vmem:[#allocation4 + $0xc8] sm:$0xff] }
 0x669   :  { %2063 = vmatprep.subr.bf16.mxu0 %v2467_v9  ;;  %2095 = vmatprep.subr.bf16.mxu1 %v2488_v33 }
 0x66a   :  { %1440 = vmatprep.mubr.f32.mxu0 %v2383_v0  ;;  %1511 = vmatprep.mubr.f32.mxu1 %v2383_v0  ;;  %v1195_v0 = vld [vmem:[#allocation4 + $0xc0] sm:$0xff] }
 0x66c   :  { %2065 = vmatpush1.bf16.msra.mxu0 %v2471_v14  ;;  %2097 = vmatpush1.bf16.msra.mxu1 %v2490_v37 }
 0x66d   :  { %2067 = vmatprep.subr.bf16.mxu0 %v2474_v17  ;;  %2099 = vmatprep.subr.bf16.mxu1 %v2496_v45 }
 0x670   :  { %2069 = vmatpush1.bf16.msra.mxu0 %v2481_v26  ;;  %2101 = vmatpush1.bf16.msra.mxu1 %v2502_v48 }
 0x671   :  { %2071 = vmatprep.subr.bf16.mxu0 %v2485_v30  ;;  %2103 = vmatprep.subr.bf16.mxu1 %v2505_v52 }
 0x674   :  { %2073 = vmatpush1.bf16.msra.mxu0 %v2494_v42  ;;  %2105 = vmatpush1.bf16.msra.mxu1 %v2514_v62  ;;  %v1198_v42 = vld [vmem:[#allocation4 + $0xd8] sm:$0xff] }
 0x675   :  { %2075 = vmatprep.subr.bf16.mxu0 %v2499_v46  ;;  %2107 = vmatprep.subr.bf16.mxu1 %v2517_v1  ;;  %v1197_v46 = vld [vmem:[#allocation4 + $0xd0] sm:$0xff] }
 0x678   :  { %2077 = vmatpush1.bf16.msra.mxu0 %v2508_v55  ;;  %2109 = vmatpush1.bf16.msra.mxu1 %v2526_v15 }
 0x679   :  { %2079 = vmatprep.subr.bf16.mxu0 %v2511_v58  ;;  %2111 = vmatprep.subr.bf16.mxu1 %v2529_v18 }
 0x67c   :  { %2081 = vmatpush1.bf16.msra.mxu0 %v2520_v7  ;;  %2113 = vmatpush1.bf16.msra.mxu1 %v2538_v31 }
 0x67d   :  { %2083 = vmatprep.subr.bf16.mxu0 %v2523_v10  ;;  %2115 = vmatprep.subr.bf16.mxu1 %v2541_v32 }
 0x680   :  { %2085 = vmatpush1.bf16.msra.mxu0 %v2532_v24  ;;  %2117 = vmatpush1.bf16.msra.mxu1 %v2548_v40 }
 0x681   :  { %2087 = vmatprep.subr.bf16.mxu0 %v2535_v27  ;;  %2119 = vmatprep.subr.bf16.mxu1 %v2551_v41 }
 0x684   :  { %2089 = vmatpush1.bf16.msra.mxu0 %v2544_v39  ;;  %2121 = vmatpush1.bf16.msra.mxu1 %v2555_v49  ;;  %v1372_v49 = vld [vmem:[#allocation4 + $0xe0] sm:$0xff] }
 0x73a   :  { %v1265_v9 = vpop.f32.mrb[12].mxu0  ;;  %v1336_v14 = vpop.f32.mrb[12].mxu1 }
 0x73b   :  { %v1341_v17 = vadd.f32 %v1265_v9, %v1195_v0  ;;  %v1267_v25 = vpop.f32.mrb[13].mxu0  ;;  %v1338_v26 = vpop.f32.mrb[13].mxu1  ;;  %v1343_v52 = vadd.f32 %v1336_v14, %v1197_v46 }
 0x73c   :  { %v1342_v30 = vadd.f32 %v1267_v25, %v1196_v8  ;;  %v1344_v45 = vadd.f32 %v1338_v26, %v1198_v42 }
 0x73d   :  { %v1604_v33 = vmul.f32 -1.442695, %v1341_v17 }
 0x73e   :  { %v1605_v37 = vmul.f32 -1.442695, %v1342_v30  ;;  %v1606_v48 = vmul.f32 -1.442695, %v1344_v45 }
 0x73f   :  { %2228 = vpow2.f32 %v1604_v33 }
 0x740   :  { %2230 = vpow2.f32 %v1605_v37 }
 0x741   :  { %2232 = vpow2.f32 %v1606_v48 }
 0x742   :  { %2234 = vtanh.f32 %v1343_v52 }
 0x749   :  { %v2229_v55 = vpop.eup %2228 }
 0x74a   :  { %v2231_v58 = vpop.eup %2230  ;;  %v1348_v62 = vadd.f32 1.0, %v2229_v55 }
 0x74b   :  { %v1354_v1 = vadd.f32 1.0, %v2231_v58  ;;  %v2233_v7 = vpop.eup %2232 }
 0x74c   :  { %2236 = vrcp.f32 %v1348_v62  ;;  %v2235_v10 = vpop.eup %2234  ;;  %v1361_v27 = vadd.f32 1.0, %v2233_v7 }
 0x74d   :  { %2238 = vrcp.f32 %v1354_v1 }
 0x74e   :  { %2240 = vrcp.f32 %v1361_v27 }
 0x756   :  { %v2237_v15 = vpop.eup %2236 }
 0x757   :  { %v2239_v18 = vpop.eup %2238  ;;  %v1365_v24 = vmul.f32 %v2237_v15, %v2235_v10 }
 0x758   :  { %v1364_v31 = vmul.f32 %v2239_v18, %v2788_v21  ;;  %v2241_v39 = vpop.eup %2240 }
 0x75a   :  { %v1366_v32 = vadd.f32 %v1365_v24, %v1364_v31 }
 0x75c   :  { %2242 = vtanh.f32 %v1366_v32 }
 0x766   :  { %v2243_v40 = vpop.eup %2242 }
 0x767   :  { %v1368_v41 = vmul.f32 %v2243_v40, %v2241_v39 }
 0x769   :  { %1370 = vst [vmem:[#allocation10 + $0x30] sm:$0xff] %v1368_v41  ;;  %1441 = vmatmul.mubr.f32.vlgmr.msra.gmra.mrb[14].mxu0 %v1368_v41  ;;  %1512 = vmatmul.mubr.f32.vlgmr.msra.gmra.mrb[14].mxu1 %v1368_v41 }
 0x83c   :  { %v1442_v44 = vpop.f32.mrb[14].mxu0  ;;  %v1513_v47 = vpop.f32.mrb[14].mxu1 }
 0x83d   :  { %v1518_v34 = vadd.f32 %v1442_v44, %v1372_v49  ;;  %v1444_v35 = vpop.f32.mrb[15].mxu0  ;;  %v1515_v36 = vpop.f32.mrb[15].mxu1  ;;  %v1520_v59 = vadd.f32 %v1513_v47, %v1374_v56 }
 0x83e   :  { %v1519_v38 = vadd.f32 %v1444_v35, %v1373_v29  ;;  %v1521_v54 = vadd.f32 %v1515_v36, %v1375_v53 }
 0x83f   :  { %v1607_v50 = vmul.f32 -1.442695, %v1518_v34 }
 0x840   :  { %v1608_v51 = vmul.f32 -1.442695, %v1519_v38  ;;  %v1609_v57 = vmul.f32 -1.442695, %v1521_v54 }
 0x841   :  { %2244 = vpow2.f32 %v1607_v50 }
 0x842   :  { %2246 = vpow2.f32 %v1608_v51 }
 0x843   :  { %2248 = vpow2.f32 %v1609_v57 }
 0x844   :  { %2250 = vtanh.f32 %v1520_v59 }
 0x84b   :  { %v2245_v60 = vpop.eup %2244 }
 0x84c   :  { %v2247_v61 = vpop.eup %2246  ;;  %v1525_v63 = vadd.f32 1.0, %v2245_v60 }
 0x84d   :  { %v1531_v2 = vadd.f32 1.0, %v2247_v61  ;;  %v2249_v4 = vpop.eup %2248 }
 0x84e   :  { %2252 = vrcp.f32 %v1525_v63  ;;  %v2251_v3 = vpop.eup %2250  ;;  %v1538_v11 = vadd.f32 1.0, %v2249_v4 }
 0x84f   :  { %2254 = vrcp.f32 %v1531_v2 }
 0x850   :  { %2256 = vrcp.f32 %v1538_v11 }
 0x858   :  { %v2253_v22 = vpop.eup %2252 }
 0x859   :  { %v2255_v5 = vpop.eup %2254  ;;  %v1542_v6 = vmul.f32 %v2253_v22, %v2251_v3 }
 0x85a   :  { %v1541_v12 = vmul.f32 %v2255_v5, %v1366_v32 }
 0x85c   :  { %v1543_v13 = vadd.f32 %v1542_v6, %v1541_v12 }
 0x85e   :  { %2258 = vtanh.f32 %v1543_v13  ;;  %1553 = vst [vmem:[#allocation11] sm:$0xff] %v1543_v13 }
 0x85f   :  { %2337 = shalt.err (!%p2334_p0)
}
 0x860   :  { %s2338_s9 = scalar_lea.hbm %s2853_s5, 128 }
 0x861   :  { %p2339_p1 = scmp.ne.s32.totalorder %s2853_s5, %s2338_s9  ;;  %p2342_p2 = scmp.lt.u32.totalorder %s2338_s9, %s2853_s5 }
 0x863   :  { %p2344_p3 = pnand %p2342_p2, %p2339_p1 }
 0x865   :  { %2347 = shalt.err (!%p2344_p3)
}
 0x866   :  { %1575 = dma.vmem_to_hbm [thread:$0]  %s1573_s30, 128, %s2853_s5, [#allocation12]   ;;  %v2257_v16 = vpop.eup %2256 }
 0x867   :  { %s2385_s16 = smov [#allocation10]  }
 0x868   :  { %s1559_s1 = sshll.u32 %s2385_s16, 4  ;;  %v2259_v19 = vpop.eup %2258  ;;  %s1560_s1 = int_to_ptr.vmem [resolvable:$true] %s1559_s1 }
 0x869   :  { %v1545_v20 = vmul.f32 %v2259_v19, %v2257_v16  ;;  %s2348_s17 = scalar_lea.vmem %s1560_s1, 1024  ;;  %p2353_p5 = scmp.lt.s32.totalorder %s1560_s1, %s1560_s1 }
 0x86a   :  { %p2349_p4 = scmp.ne.s32.totalorder %s1560_s1, %s2348_s17  ;;  %p2354_p6 = scmp.lt.s32.totalorder %s2348_s17, %s2348_s17 }
 0x86b   :  { %1547 = vst [vmem:[#allocation10 + $0x38] sm:$0xff] %v1545_v20 }
 0x86c   :  { %p2355_p7 = por %p2354_p6, %p2353_p5 }
 0x86e   :  { %p2356_p8 = pnand %p2355_p7, %p2349_p4 }
 0x870   :  { %2359 = shalt.err (!%p2356_p8)
}
 0x871   :  { %s2360_s20 = scalar_lea.hbm %s2852_s4, 1024 }
 0x872   :  { %p2361_p9 = scmp.ne.s32.totalorder %s2852_s4, %s2360_s20  ;;  %p2364_p10 = scmp.lt.u32.totalorder %s2360_s20, %s2852_s4 }
 0x874   :  { %p2366_p11 = pnand %p2364_p10, %p2361_p9 }
 0x876   :  { %2369 = shalt.err (!%p2366_p11)
}
 0x877   :  { %s2386_s25 = smov 128   ;;  %s2387_s26 = smov 8  }
 0x878   :  { %1565 = dma.vmem_to_hbm [thread:$0]  %s1560_s1, 1024, %s2852_s4, [#allocation6], %s2386_s25, %s2386_s25, %s2387_s26  }
 0x879   :  { %2374 = dma.done.wait [#allocation6], 1024  }
 0x87a   :  { %2375 = vsyncadd [#allocation6], 4294966272 }
 0x87b   :  { %2376 = dma.done.wait [#allocation12], 128  }
 0x87c   :  { %2377 = vsyncadd [#allocation12], 4294967168 }
 0x87d   :  { %1582 = vsyncpa [#allocation5], 1 }
 0x87e   :  { %1583 = vsyncpa [#allocation8], 1 }
 0x87f   :  { %1584 = vsyncpa [#allocation6], 1 }
 0x880   :  { %1585 = vsyncpa [#allocation12], 1 }

</bundles_post_ra>
